<compile_context>
chip_gen: v7x
topology: tpu7x:2x2x1
jax: 0.10.0
libtpu: 0.0.40
codegen_flags: <defaults>
</compile_context>

<pallas_src>
import functools

import jax
import jax.numpy as jnp
from jax.experimental import pallas as pl
from jax.experimental.pallas import tpu as pltpu


# ----------------------------------------------------------------------------
# Helpers
# ----------------------------------------------------------------------------
def _pick_tile(n, cap, quantum):
    """Largest divisor of n that is <= cap, preferring multiples of `quantum`."""
    cap = max(1, min(n, cap))
    for q in (quantum, 8, 1):
        for t in range(cap, 0, -1):
            if n % t == 0 and t % q == 0:
                return t
    return n


def _vmem_limit_bytes():
    """Per-generation scoped-VMEM budget (v7x has 64 MiB physical per TC)."""
    try:
        cap = int(pltpu.get_tpu_info().vmem_capacity_bytes)
    except Exception:
        cap = 64 * 1024 * 1024
    return int(min(cap // 2, 96 * 1024 * 1024))


def _onehot_rows(table_f32, ids):
    """Exact row gather from a VMEM-resident table via one-hot MXU matmul.

    table_f32: (n, d) f32 (loaded from the resident block), ids: (rows, 1) i32.
    """
    rows = ids.shape[0]
    n = table_f32.shape[0]
    iota = jax.lax.broadcasted_iota(jnp.int32, (rows, n), 1)
    onehot = jnp.where(ids == iota, 1.0, 0.0)          # (rows, n) f32, exact
    return jnp.dot(onehot, table_f32, preferred_element_type=jnp.float32)


# ----------------------------------------------------------------------------
# Pass 1a: VMEM-resident tables, in-kernel gathers (small-table path).
# ----------------------------------------------------------------------------
def _pass1_resident_kernel(ent_ref, rel_ref, hi_ref, ri_ref, ti_ref,
                           nhi_ref, nti_ref, pos_ref, negd_ref, srow_ref):
    f32 = jnp.float32
    ent = ent_ref[...].astype(f32)        # (E, d), resident across the grid
    rel = rel_ref[...].astype(f32)        # (R, d), resident across the grid

    h = _onehot_rows(ent, hi_ref[...])    # (tb, d) f32
    t = _onehot_rows(ent, ti_ref[...])
    r = _onehot_rows(rel, ri_ref[...])

    # L1 distance (norm=1), matching torch.norm(h + r - t, p=1, dim=-1).
    pos_ref[...] = jnp.sum(jnp.abs(h + r - t), axis=-1, keepdims=True)

    relu = lambda x: jnp.maximum(x, 0.0)
    s = relu(jnp.sum(h * h, axis=-1, keepdims=True) - 1.0)
    s = s + relu(jnp.sum(t * t, axis=-1, keepdims=True) - 1.0)

    m = nhi_ref.shape[1]
    for j in range(m):                    # static unroll; m is small on this path
        nh = _onehot_rows(ent, nhi_ref[:, j:j + 1])
        nt = _onehot_rows(ent, nti_ref[:, j:j + 1])
        negd_ref[:, j:j + 1] = jnp.sum(jnp.abs(nh + r - nt), axis=-1,
                                       keepdims=True)
        s = s + relu(jnp.sum(nh * nh, axis=-1, keepdims=True) - 1.0)
        s = s + relu(jnp.sum(nt * nt, axis=-1, keepdims=True) - 1.0)
    srow_ref[...] = s


def _pass1_resident(entity_emb, relation_emb, h, r, t, nh_ids, nt_ids,
                    vmem_limit):
    E, d = (int(x) for x in entity_emb.shape)
    R = int(relation_emb.shape[0])
    b = int(h.shape[0])
    m = int(nh_ids.shape[1])

    cap = min(b, 256)
    if b >= 32:
        cap = min(cap, b // 2)   # keep >= 2 grid steps for v7x megacore
    tb = _pick_tile(b, cap, 8)

    h2 = h.reshape(b, 1).astype(jnp.int32)
    r2 = r.reshape(b, 1).astype(jnp.int32)
    t2 = t.reshape(b, 1).astype(jnp.int32)

    return pl.pallas_call(
        _pass1_resident_kernel,
        out_shape=(
            jax.ShapeDtypeStruct((b, 1), jnp.float32),
            jax.ShapeDtypeStruct((b, m), jnp.float32),
            jax.ShapeDtypeStruct((b, 1), jnp.float32),
        ),
        grid=(b // tb,),
        in_specs=[
            pl.BlockSpec((E, d), lambda i: (0, 0)),   # entity table: resident
            pl.BlockSpec((R, d), lambda i: (0, 0)),   # relation table: resident
            pl.BlockSpec((tb, 1), lambda i: (i, 0)),
            pl.BlockSpec((tb, 1), lambda i: (i, 0)),
            pl.BlockSpec((tb, 1), lambda i: (i, 0)),
            pl.BlockSpec((tb, m), lambda i: (i, 0)),
            pl.BlockSpec((tb, m), lambda i: (i, 0)),
        ],
        out_specs=(
            pl.BlockSpec((tb, 1), lambda i: (i, 0)),
            pl.BlockSpec((tb, m), lambda i: (i, 0)),
            pl.BlockSpec((tb, 1), lambda i: (i, 0)),
        ),
        compiler_params=pltpu.CompilerParams(
            dimension_semantics=("parallel",),
            vmem_limit_bytes=vmem_limit),
    )(entity_emb, relation_emb, h2, r2, t2, nh_ids, nt_ids)


# ----------------------------------------------------------------------------
# Pass 1b: streaming fallback for large embedding tables.
# ----------------------------------------------------------------------------
def _pass1_streaming_kernel(h_ref, r_ref, t_ref, nh_ref, nt_ref,
                            pos_ref, negd_ref, srow_ref, *, m_chunk):
    f32 = jnp.float32
    h = h_ref[...].astype(f32)
    r = r_ref[...].astype(f32)
    t = t_ref[...].astype(f32)

    pos_ref[...] = jnp.sum(jnp.abs(h + r - t), axis=-1, keepdims=True)

    relu = lambda x: jnp.maximum(x, 0.0)
    s = relu(jnp.sum(h * h, axis=-1, keepdims=True) - 1.0)
    s = s + relu(jnp.sum(t * t, axis=-1, keepdims=True) - 1.0)

    r3 = r[:, None, :]
    m = nh_ref.shape[1]
    # Chunk the m axis so the f32 upcast temporaries stay bounded (v7x VMEM).
    for c0 in range(0, m, m_chunk):
        c1 = min(c0 + m_chunk, m)
        nh = nh_ref[:, c0:c1, :].astype(f32)
        nt = nt_ref[:, c0:c1, :].astype(f32)
        negd_ref[:, c0:c1] = jnp.sum(jnp.abs(nh + r3 - nt), axis=-1)
        s = s + jnp.sum(relu(jnp.sum(nh * nh, axis=-1) - 1.0), axis=-1,
                        keepdims=True)
        s = s + jnp.sum(relu(jnp.sum(nt * nt, axis=-1) - 1.0), axis=-1,
                        keepdims=True)
    srow_ref[...] = s


def _pass1_streaming(h_e, r_e, t_e, nh_e, nt_e, vmem_limit):
    b, m, d = (int(x) for x in nh_e.shape)
    itemsize = int(nh_e.dtype.itemsize)

    # Size tb from the double-buffered input working set (not a fixed cap).
    per_row = 2 * 2 * m * d * itemsize + 3 * 2 * d * itemsize
    budget = max(vmem_limit // 3, 2 * 1024 * 1024)
    cap = max(16, min(budget // per_row, 1024))
    if b >= 32:
        cap = min(cap, b // 2)   # keep >= 2 grid steps for v7x megacore
    tb = _pick_tile(b, cap, 16)  # bf16 sublane quantum

    f32_budget = max(vmem_limit // 8, 1 * 1024 * 1024)
    m_chunk = max(1, min(m, f32_budget // (3 * tb * d * 4)))

    kernel = functools.partial(_pass1_streaming_kernel, m_chunk=m_chunk)
    return pl.pallas_call(
        kernel,
        out_shape=(
            jax.ShapeDtypeStruct((b, 1), jnp.float32),
            jax.ShapeDtypeStruct((b, m), jnp.float32),
            jax.ShapeDtypeStruct((b, 1), jnp.float32),
        ),
        grid=(b // tb,),
        in_specs=[
            pl.BlockSpec((tb, d), lambda i: (i, 0)),
            pl.BlockSpec((tb, d), lambda i: (i, 0)),
            pl.BlockSpec((tb, d), lambda i: (i, 0)),
            pl.BlockSpec((tb, m, d), lambda i: (i, 0, 0)),
            pl.BlockSpec((tb, m, d), lambda i: (i, 0, 0)),
        ],
        out_specs=(
            pl.BlockSpec((tb, 1), lambda i: (i, 0)),
            pl.BlockSpec((tb, m), lambda i: (i, 0)),
            pl.BlockSpec((tb, 1), lambda i: (i, 0)),
        ),
        compiler_params=pltpu.CompilerParams(
            dimension_semantics=("parallel",),
            vmem_limit_bytes=vmem_limit),
    )(h_e, r_e, t_e, nh_e, nt_e)


# ----------------------------------------------------------------------------
# Pass 2: cross relu-reduction pos_d x flattened neg_d (neg stays resident).
# Reproduces the PyTorch [b,1,1] + margin - [b,m] -> [b,b,m] mean without
# ever materializing the [b,b,m] tensor.
# ----------------------------------------------------------------------------
def _pass2_kernel(pos_ref, neg_ref, out_ref, *, margin, chunk):
    pos = pos_ref[...]                              # (pt, 1) f32
    n = neg_ref.shape[-1]
    acc = jnp.zeros_like(pos)
    for c0 in range(0, n, chunk):                   # in-kernel lane chunking
        c1 = min(c0 + chunk, n)
        neg = neg_ref[:, c0:c1]                     # (1, c1-c0)
        acc = acc + jnp.sum(jnp.maximum(pos + margin - neg, 0.0),
                            axis=-1, keepdims=True)
    out_ref[...] = acc


def _pass2(pos_d, neg_flat, margin, vmem_limit):
    b = int(pos_d.shape[0])
    n = int(neg_flat.shape[1])

    cap = min(b, 256)
    if b >= 32:
        cap = min(cap, b // 2)
    pt = _pick_tile(b, cap, 8)
    chunk = min(n, 2048)

    kernel = functools.partial(_pass2_kernel, margin=float(margin), chunk=chunk)
    return pl.pallas_call(
        kernel,
        out_shape=jax.ShapeDtypeStruct((b, 1), jnp.float32),
        grid=(b // pt,),
        in_specs=[
            pl.BlockSpec((pt, 1), lambda i: (i, 0)),
            pl.BlockSpec((1, n), lambda i: (0, 0)),   # resident: fetched once
        ],
        out_specs=pl.BlockSpec((pt, 1), lambda i: (i, 0)),
        compiler_params=pltpu.CompilerParams(
            dimension_semantics=("parallel",),
            vmem_limit_bytes=vmem_limit),
    )(pos_d, neg_flat)


# ----------------------------------------------------------------------------
# Wrapper: path selection + two pallas_calls + scalar combine.
# ----------------------------------------------------------------------------
def transe_forward(entity_emb, relation_emb, h, r, t, neg_samples,
                   *, margin=1.0, c=1.0):
    b = int(h.shape[0])
    m = int(neg_samples.shape[1])
    E, d = (int(x) for x in entity_emb.shape)
    R = int(relation_emb.shape[0])
    vmem_limit = _vmem_limit_bytes()

    nh_ids = neg_samples[:, :, 0].astype(jnp.int32)
    nt_ids = neg_samples[:, :, 1].astype(jnp.int32)

    table_bytes = (E + R) * d * int(entity_emb.dtype.itemsize)
    resident = (table_bytes <= 2 * 1024 * 1024) and (E <= 2048) and (m <= 64)

    if resident:
        # Fused in-kernel gathers; no (b, m, d) HBM slabs at all.
        pos_d, neg_d, srow = _pass1_resident(
            entity_emb, relation_emb, h, r, t, nh_ids, nt_ids, vmem_limit)
    else:
        # TODO(synk): large-table path still gathers via XLA jnp.take; replace
        # with scalar-prefetched per-row DMA from a memory_space=pl.ANY table.
        h_e = jnp.take(entity_emb, h, axis=0)
        t_e = jnp.take(entity_emb, t, axis=0)
        r_e = jnp.take(relation_emb, r, axis=0)
        nh_e = jnp.take(entity_emb, nh_ids, axis=0)
        nt_e = jnp.take(entity_emb, nt_ids, axis=0)
        pos_d, neg_d, srow = _pass1_streaming(h_e, r_e, t_e, nh_e, nt_e,
                                              vmem_limit)

    neg_flat = neg_d.reshape(1, b * m)
    row_margin = _pass2(pos_d, neg_flat, margin, vmem_limit)

    margin_loss = jnp.sum(row_margin) / float(b * b * m)
    scale_loss = jnp.sum(srow) / float(2 * b + 2 * b * m)
    return margin_loss + c * scale_loss


# ----------------------------------------------------------------------------
# Pure-JAX reference (mirrors the PyTorch forward, incl. its [b,b,m] broadcast).
# ----------------------------------------------------------------------------
def transe_forward_ref(entity_emb, relation_emb, h, r, t, neg_samples,
                       *, margin=1.0, c=1.0):
    f32 = jnp.float32
    h_e = entity_emb[h].astype(f32)[:, None, :]           # (b,1,d)
    t_e = entity_emb[t].astype(f32)[:, None, :]           # (b,1,d)
    r_e = relation_emb[r].astype(f32)[:, None, :]         # (b,1,d)
    nh_e = entity_emb[neg_samples[:, :, 0]].astype(f32)   # (b,m,d)
    nt_e = entity_emb[neg_samples[:, :, 1]].astype(f32)   # (b,m,d)

    pos_d = jnp.sum(jnp.abs(h_e + r_e - t_e), axis=-1)        # (b,1)
    neg_d = jnp.sum(jnp.abs(nh_e + r_e - nt_e), axis=-1)      # (b,m)
    margin_loss = jnp.mean(
        jax.nn.relu(pos_d[:, :, None] + margin - neg_d[None, :, :]))  # [b,b,m]

    d = entity_emb.shape[-1]
    embs = jnp.concatenate([h_e.reshape(-1, d), t_e.reshape(-1, d),
                            nh_e.reshape(-1, d), nt_e.reshape(-1, d)], axis=0)
    scale_loss = jnp.mean(jax.nn.relu(jnp.sum(embs ** 2, axis=-1) - 1.0))
    return margin_loss + c * scale_loss


# ----------------------------------------------------------------------------
# Deterministic parameter init (xavier_uniform, matching nn.init semantics).
# ----------------------------------------------------------------------------
def xavier_uniform(key, shape):
    fan_out, fan_in = shape
    bound = (6.0 / (fan_in + fan_out)) ** 0.5
    return jax.random.uniform(key, shape, jnp.float32, -bound, bound)


if __name__ == "__main__":
    num_entities, num_relations = 32, 8
    entity_dim, relation_dim = 128, 4   # d multiple of 128 (lane-dense)
    batch, num_neg = 8, 8
    margin, c = 1.0, 1.0

    root = jax.random.PRNGKey(0)
    k_ent, k_rel, k_h, k_r, k_t, k_neg = jax.random.split(root, 6)

    # bf16 embedding storage halves HBM traffic; all kernel math is f32.
    entity_emb = xavier_uniform(k_ent, (num_entities, entity_dim)).astype(
        jnp.bfloat16)
    relation_emb = xavier_uniform(k_rel, (num_relations, entity_dim)).astype(
        jnp.bfloat16)
    # TODO(synk): relation_proj embedding is defined in __init__ but never used
    # in forward(), so it is omitted here.

    h = jax.random.randint(k_h, (batch,), 0, num_entities, dtype=jnp.int32)
    r = jax.random.randint(k_r, (batch,), 0, num_relations, dtype=jnp.int32)
    t = jax.random.randint(k_t, (batch,), 0, num_entities, dtype=jnp.int32)
    neg_samples = jax.random.randint(k_neg, (batch, num_neg, 2), 0,
                                     num_entities, dtype=jnp.int32)

    loss = jax.block_until_ready(
        transe_forward(entity_emb, relation_emb, h, r, t, neg_samples,
                       margin=margin, c=c))
    loss_ref = jax.block_until_ready(
        transe_forward_ref(entity_emb, relation_emb, h, r, t, neg_samples,
                           margin=margin, c=c))

    assert jnp.allclose(loss, loss_ref, atol=1e-3, rtol=1e-3), (loss, loss_ref)
    print("KERNEL_OK")
</pallas_src>

<mosaic_0001>
module attributes {stable_mosaic.version = 11 : i64} {
  func.func @_pass1_resident_kernel(%arg0: i32, %arg1: memref<32x128xbf16, #tpu.memory_space<vmem>>, %arg2: memref<8x128xbf16, #tpu.memory_space<vmem>>, %arg3: memref<8x1xi32, #tpu.memory_space<vmem>>, %arg4: memref<8x1xi32, #tpu.memory_space<vmem>>, %arg5: memref<8x1xi32, #tpu.memory_space<vmem>>, %arg6: memref<8x8xi32, #tpu.memory_space<vmem>>, %arg7: memref<8x8xi32, #tpu.memory_space<vmem>>, %arg8: memref<8x1xf32, #tpu.memory_space<vmem>>, %arg9: memref<8x8xf32, #tpu.memory_space<vmem>>, %arg10: memref<8x1xf32, #tpu.memory_space<vmem>>) attributes {dimension_semantics = [#tpu.dimension_semantics<parallel>], iteration_bounds = array<i64: 1>, scalar_prefetch = 0 : i64, scratch_operands = 0 : i64, tpu.core_type = #tpu.core_type<tc>, window_params = [{pipeline_mode = #tpu.pipeline_mode<synchronous>, transform_indices = @transform_0, window_bounds = array<i64: 32, 128>}, {pipeline_mode = #tpu.pipeline_mode<synchronous>, transform_indices = @transform_1, window_bounds = array<i64: 8, 128>}, {transform_indices = @transform_2, window_bounds = array<i64: 8, 1>}, {transform_indices = @transform_3, window_bounds = array<i64: 8, 1>}, {transform_indices = @transform_4, window_bounds = array<i64: 8, 1>}, {transform_indices = @transform_5, window_bounds = array<i64: 8, 8>}, {transform_indices = @transform_6, window_bounds = array<i64: 8, 8>}, {transform_indices = @transform_7, window_bounds = array<i64: 8, 1>}, {transform_indices = @transform_8, window_bounds = array<i64: 8, 8>}, {transform_indices = @transform_9, window_bounds = array<i64: 8, 1>}]} {
    %c0 = arith.constant 0 : index
    %c0_0 = arith.constant 0 : index
    %0 = vector.load %arg1[%c0, %c0_0] : memref<32x128xbf16, #tpu.memory_space<vmem>>, vector<32x128xbf16>
    %1 = arith.extf %0 : vector<32x128xbf16> to vector<32x128xf32>
    %c0_1 = arith.constant 0 : index
    %c0_2 = arith.constant 0 : index
    %2 = vector.load %arg2[%c0_1, %c0_2] : memref<8x128xbf16, #tpu.memory_space<vmem>>, vector<8x128xbf16>
    %3 = arith.extf %2 : vector<8x128xbf16> to vector<8x128xf32>
    %c0_3 = arith.constant 0 : index
    %c0_4 = arith.constant 0 : index
    %4 = vector.load %arg3[%c0_3, %c0_4] : memref<8x1xi32, #tpu.memory_space<vmem>>, vector<8x1xi32>
    %5 = tpu.iota {dimensions = array<i32: 1>} : vector<8x32xi32>
    %6 = vector.broadcast %4 : vector<8x1xi32> to vector<8x32xi32>
    %7 = arith.cmpi eq, %6, %5 : vector<8x32xi32>
    %cst = arith.constant 1.000000e+00 : f32
    %cst_5 = arith.constant 0.000000e+00 : f32
    %8 = vector.broadcast %cst : f32 to vector<8x32xf32>
    %9 = vector.broadcast %cst_5 : f32 to vector<8x32xf32>
    %10 = arith.select %7, %8, %9 : vector<8x32xi1>, vector<8x32xf32>
    %cst_6 = arith.constant dense<0.000000e+00> : vector<8x128xf32>
    %11 = tpu.matmul %10, %1, %cst_6 {dimension_numbers = #tpu.dot_dimension_numbers<[1], [0], [0], [1], [0, 0, 1, 1], [], []>} : vector<8x32xf32>, vector<32x128xf32>, vector<8x128xf32> -> vector<8x128xf32>
    %c0_7 = arith.constant 0 : index
    %c0_8 = arith.constant 0 : index
    %12 = vector.load %arg5[%c0_7, %c0_8] : memref<8x1xi32, #tpu.memory_space<vmem>>, vector<8x1xi32>
    %13 = tpu.iota {dimensions = array<i32: 1>} : vector<8x32xi32>
    %14 = vector.broadcast %12 : vector<8x1xi32> to vector<8x32xi32>
    %15 = arith.cmpi eq, %14, %13 : vector<8x32xi32>
    %cst_9 = arith.constant 1.000000e+00 : f32
    %cst_10 = arith.constant 0.000000e+00 : f32
    %16 = vector.broadcast %cst_9 : f32 to vector<8x32xf32>
    %17 = vector.broadcast %cst_10 : f32 to vector<8x32xf32>
    %18 = arith.select %15, %16, %17 : vector<8x32xi1>, vector<8x32xf32>
    %cst_11 = arith.constant dense<0.000000e+00> : vector<8x128xf32>
    %19 = tpu.matmul %18, %1, %cst_11 {dimension_numbers = #tpu.dot_dimension_numbers<[1], [0], [0], [1], [0, 0, 1, 1], [], []>} : vector<8x32xf32>, vector<32x128xf32>, vector<8x128xf32> -> vector<8x128xf32>
    %c0_12 = arith.constant 0 : index
    %c0_13 = arith.constant 0 : index
    %20 = vector.load %arg4[%c0_12, %c0_13] : memref<8x1xi32, #tpu.memory_space<vmem>>, vector<8x1xi32>
    %21 = tpu.iota {dimensions = array<i32: 1>} : vector<8x8xi32>
    %22 = vector.broadcast %20 : vector<8x1xi32> to vector<8x8xi32>
    %23 = arith.cmpi eq, %22, %21 : vector<8x8xi32>
    %cst_14 = arith.constant 1.000000e+00 : f32
    %cst_15 = arith.constant 0.000000e+00 : f32
    %24 = vector.broadcast %cst_14 : f32 to vector<8x8xf32>
    %25 = vector.broadcast %cst_15 : f32 to vector<8x8xf32>
    %26 = arith.select %23, %24, %25 : vector<8x8xi1>, vector<8x8xf32>
    %cst_16 = arith.constant dense<0.000000e+00> : vector<8x128xf32>
    %27 = tpu.matmul %26, %3, %cst_16 {dimension_numbers = #tpu.dot_dimension_numbers<[1], [0], [0], [1], [0, 0, 1, 1], [], []>} : vector<8x8xf32>, vector<8x128xf32>, vector<8x128xf32> -> vector<8x128xf32>
    %28 = arith.addf %11, %27 : vector<8x128xf32>
    %29 = arith.subf %28, %19 : vector<8x128xf32>
    %30 = math.absf %29 : vector<8x128xf32>
    %cst_17 = arith.constant dense<0.000000e+00> : vector<8xf32>
    %31 = vector.multi_reduction <add>, %30, %cst_17 [1] : vector<8x128xf32> to vector<8xf32>
    %32 = vector.shape_cast %31 : vector<8xf32> to vector<8x1xf32>
    %c0_18 = arith.constant 0 : index
    %c0_19 = arith.constant 0 : index
    %33 = vector.load %arg8[%c0_18, %c0_19] : memref<8x1xf32, #tpu.memory_space<vmem>>, vector<8x1xf32>
    tpu.vector_store %arg8[%c0_18, %c0_19], %32 {strides = array<i32>} : memref<8x1xf32, #tpu.memory_space<vmem>>, vector<8x1xf32>,
    %34 = arith.mulf %11, %11 : vector<8x128xf32>
    %cst_20 = arith.constant dense<0.000000e+00> : vector<8xf32>
    %35 = vector.multi_reduction <add>, %34, %cst_20 [1] : vector<8x128xf32> to vector<8xf32>
    %36 = vector.shape_cast %35 : vector<8xf32> to vector<8x1xf32>
    %cst_21 = arith.constant 1.000000e+00 : f32
    %37 = vector.broadcast %cst_21 : f32 to vector<8x1xf32>
    %38 = arith.subf %36, %37 : vector<8x1xf32>
    %cst_22 = arith.constant 0.000000e+00 : f32
    %39 = vector.broadcast %cst_22 : f32 to vector<8x1xf32>
    %40 = arith.maximumf %38, %39 : vector<8x1xf32>
    %41 = arith.mulf %19, %19 : vector<8x128xf32>
    %cst_23 = arith.constant dense<0.000000e+00> : vector<8xf32>
    %42 = vector.multi_reduction <add>, %41, %cst_23 [1] : vector<8x128xf32> to vector<8xf32>
    %43 = vector.shape_cast %42 : vector<8xf32> to vector<8x1xf32>
    %cst_24 = arith.constant 1.000000e+00 : f32
    %44 = vector.broadcast %cst_24 : f32 to vector<8x1xf32>
    %45 = arith.subf %43, %44 : vector<8x1xf32>
    %cst_25 = arith.constant 0.000000e+00 : f32
    %46 = vector.broadcast %cst_25 : f32 to vector<8x1xf32>
    %47 = arith.maximumf %45, %46 : vector<8x1xf32>
    %48 = arith.addf %40, %47 : vector<8x1xf32>
    %c0_26 = arith.constant 0 : index
    %c0_27 = arith.constant 0 : index
    %49 = vector.load %arg6[%c0_26, %c0_27] : memref<8x8xi32, #tpu.memory_space<vmem>>, vector<8x1xi32>
    %50 = tpu.iota {dimensions = array<i32: 1>} : vector<8x32xi32>
    %51 = vector.broadcast %49 : vector<8x1xi32> to vector<8x32xi32>
    %52 = arith.cmpi eq, %51, %50 : vector<8x32xi32>
    %cst_28 = arith.constant 1.000000e+00 : f32
    %cst_29 = arith.constant 0.000000e+00 : f32
    %53 = vector.broadcast %cst_28 : f32 to vector<8x32xf32>
    %54 = vector.broadcast %cst_29 : f32 to vector<8x32xf32>
    %55 = arith.select %52, %53, %54 : vector<8x32xi1>, vector<8x32xf32>
    %cst_30 = arith.constant dense<0.000000e+00> : vector<8x128xf32>
    %56 = tpu.matmul %55, %1, %cst_30 {dimension_numbers = #tpu.dot_dimension_numbers<[1], [0], [0], [1], [0, 0, 1, 1], [], []>} : vector<8x32xf32>, vector<32x128xf32>, vector<8x128xf32> -> vector<8x128xf32>
    %c0_31 = arith.constant 0 : index
    %c0_32 = arith.constant 0 : index
    %57 = vector.load %arg7[%c0_31, %c0_32] : memref<8x8xi32, #tpu.memory_space<vmem>>, vector<8x1xi32>
    %58 = tpu.iota {dimensions = array<i32: 1>} : vector<8x32xi32>
    %59 = vector.broadcast %57 : vector<8x1xi32> to vector<8x32xi32>
    %60 = arith.cmpi eq, %59, %58 : vector<8x32xi32>
    %cst_33 = arith.constant 1.000000e+00 : f32
    %cst_34 = arith.constant 0.000000e+00 : f32
    %61 = vector.broadcast %cst_33 : f32 to vector<8x32xf32>
    %62 = vector.broadcast %cst_34 : f32 to vector<8x32xf32>
    %63 = arith.select %60, %61, %62 : vector<8x32xi1>, vector<8x32xf32>
    %cst_35 = arith.constant dense<0.000000e+00> : vector<8x128xf32>
    %64 = tpu.matmul %63, %1, %cst_35 {dimension_numbers = #tpu.dot_dimension_numbers<[1], [0], [0], [1], [0, 0, 1, 1], [], []>} : vector<8x32xf32>, vector<32x128xf32>, vector<8x128xf32> -> vector<8x128xf32>
    %65 = arith.addf %56, %27 : vector<8x128xf32>
    %66 = arith.subf %65, %64 : vector<8x128xf32>
    %67 = math.absf %66 : vector<8x128xf32>
    %cst_36 = arith.constant dense<0.000000e+00> : vector<8xf32>
    %68 = vector.multi_reduction <add>, %67, %cst_36 [1] : vector<8x128xf32> to vector<8xf32>
    %69 = vector.shape_cast %68 : vector<8xf32> to vector<8x1xf32>
    %c0_37 = arith.constant 0 : index
    %c0_38 = arith.constant 0 : index
    %70 = vector.load %arg9[%c0_37, %c0_38] : memref<8x8xf32, #tpu.memory_space<vmem>>, vector<8x1xf32>
    tpu.vector_store %arg9[%c0_37, %c0_38], %69 {strides = array<i32>} : memref<8x8xf32, #tpu.memory_space<vmem>>, vector<8x1xf32>,
    %71 = arith.mulf %56, %56 : vector<8x128xf32>
    %cst_39 = arith.constant dense<0.000000e+00> : vector<8xf32>
    %72 = vector.multi_reduction <add>, %71, %cst_39 [1] : vector<8x128xf32> to vector<8xf32>
    %73 = vector.shape_cast %72 : vector<8xf32> to vector<8x1xf32>
    %cst_40 = arith.constant 1.000000e+00 : f32
    %74 = vector.broadcast %cst_40 : f32 to vector<8x1xf32>
    %75 = arith.subf %73, %74 : vector<8x1xf32>
    %cst_41 = arith.constant 0.000000e+00 : f32
    %76 = vector.broadcast %cst_41 : f32 to vector<8x1xf32>
    %77 = arith.maximumf %75, %76 : vector<8x1xf32>
    %78 = arith.addf %48, %77 : vector<8x1xf32>
    %79 = arith.mulf %64, %64 : vector<8x128xf32>
    %cst_42 = arith.constant dense<0.000000e+00> : vector<8xf32>
    %80 = vector.multi_reduction <add>, %79, %cst_42 [1] : vector<8x128xf32> to vector<8xf32>
    %81 = vector.shape_cast %80 : vector<8xf32> to vector<8x1xf32>
    %cst_43 = arith.constant 1.000000e+00 : f32
    %82 = vector.broadcast %cst_43 : f32 to vector<8x1xf32>
    %83 = arith.subf %81, %82 : vector<8x1xf32>
    %cst_44 = arith.constant 0.000000e+00 : f32
    %84 = vector.broadcast %cst_44 : f32 to vector<8x1xf32>
    %85 = arith.maximumf %83, %84 : vector<8x1xf32>
    %86 = arith.addf %78, %85 : vector<8x1xf32>
    %c0_45 = arith.constant 0 : index
    %c1 = arith.constant 1 : index
    %87 = vector.load %arg6[%c0_45, %c1] : memref<8x8xi32, #tpu.memory_space<vmem>>, vector<8x1xi32>
    %88 = tpu.iota {dimensions = array<i32: 1>} : vector<8x32xi32>
    %89 = vector.broadcast %87 : vector<8x1xi32> to vector<8x32xi32>
    %90 = arith.cmpi eq, %89, %88 : vector<8x32xi32>
    %cst_46 = arith.constant 1.000000e+00 : f32
    %cst_47 = arith.constant 0.000000e+00 : f32
    %91 = vector.broadcast %cst_46 : f32 to vector<8x32xf32>
    %92 = vector.broadcast %cst_47 : f32 to vector<8x32xf32>
    %93 = arith.select %90, %91, %92 : vector<8x32xi1>, vector<8x32xf32>
    %cst_48 = arith.constant dense<0.000000e+00> : vector<8x128xf32>
    %94 = tpu.matmul %93, %1, %cst_48 {dimension_numbers = #tpu.dot_dimension_numbers<[1], [0], [0], [1], [0, 0, 1, 1], [], []>} : vector<8x32xf32>, vector<32x128xf32>, vector<8x128xf32> -> vector<8x128xf32>
    %c0_49 = arith.constant 0 : index
    %c1_50 = arith.constant 1 : index
    %95 = vector.load %arg7[%c0_49, %c1_50] : memref<8x8xi32, #tpu.memory_space<vmem>>, vector<8x1xi32>
    %96 = tpu.iota {dimensions = array<i32: 1>} : vector<8x32xi32>
    %97 = vector.broadcast %95 : vector<8x1xi32> to vector<8x32xi32>
    %98 = arith.cmpi eq, %97, %96 : vector<8x32xi32>
    %cst_51 = arith.constant 1.000000e+00 : f32
    %cst_52 = arith.constant 0.000000e+00 : f32
    %99 = vector.broadcast %cst_51 : f32 to vector<8x32xf32>
    %100 = vector.broadcast %cst_52 : f32 to vector<8x32xf32>
    %101 = arith.select %98, %99, %100 : vector<8x32xi1>, vector<8x32xf32>
    %cst_53 = arith.constant dense<0.000000e+00> : vector<8x128xf32>
    %102 = tpu.matmul %101, %1, %cst_53 {dimension_numbers = #tpu.dot_dimension_numbers<[1], [0], [0], [1], [0, 0, 1, 1], [], []>} : vector<8x32xf32>, vector<32x128xf32>, vector<8x128xf32> -> vector<8x128xf32>
    %103 = arith.addf %94, %27 : vector<8x128xf32>
    %104 = arith.subf %103, %102 : vector<8x128xf32>
    %105 = math.absf %104 : vector<8x128xf32>
    %cst_54 = arith.constant dense<0.000000e+00> : vector<8xf32>
    %106 = vector.multi_reduction <add>, %105, %cst_54 [1] : vector<8x128xf32> to vector<8xf32>
    %107 = vector.shape_cast %106 : vector<8xf32> to vector<8x1xf32>
    %c0_55 = arith.constant 0 : index
    %c1_56 = arith.constant 1 : index
    %108 = vector.load %arg9[%c0_55, %c1_56] : memref<8x8xf32, #tpu.memory_space<vmem>>, vector<8x1xf32>
    tpu.vector_store %arg9[%c0_55, %c1_56], %107 {strides = array<i32>} : memref<8x8xf32, #tpu.memory_space<vmem>>, vector<8x1xf32>,
    %109 = arith.mulf %94, %94 : vector<8x128xf32>
    %cst_57 = arith.constant dense<0.000000e+00> : vector<8xf32>
    %110 = vector.multi_reduction <add>, %109, %cst_57 [1] : vector<8x128xf32> to vector<8xf32>
    %111 = vector.shape_cast %110 : vector<8xf32> to vector<8x1xf32>
    %cst_58 = arith.constant 1.000000e+00 : f32
    %112 = vector.broadcast %cst_58 : f32 to vector<8x1xf32>
    %113 = arith.subf %111, %112 : vector<8x1xf32>
    %cst_59 = arith.constant 0.000000e+00 : f32
    %114 = vector.broadcast %cst_59 : f32 to vector<8x1xf32>
    %115 = arith.maximumf %113, %114 : vector<8x1xf32>
    %116 = arith.addf %86, %115 : vector<8x1xf32>
    %117 = arith.mulf %102, %102 : vector<8x128xf32>
    %cst_60 = arith.constant dense<0.000000e+00> : vector<8xf32>
    %118 = vector.multi_reduction <add>, %117, %cst_60 [1] : vector<8x128xf32> to vector<8xf32>
    %119 = vector.shape_cast %118 : vector<8xf32> to vector<8x1xf32>
    %cst_61 = arith.constant 1.000000e+00 : f32
    %120 = vector.broadcast %cst_61 : f32 to vector<8x1xf32>
    %121 = arith.subf %119, %120 : vector<8x1xf32>
    %cst_62 = arith.constant 0.000000e+00 : f32
    %122 = vector.broadcast %cst_62 : f32 to vector<8x1xf32>
    %123 = arith.maximumf %121, %122 : vector<8x1xf32>
    %124 = arith.addf %116, %123 : vector<8x1xf32>
    %c0_63 = arith.constant 0 : index
    %c2 = arith.constant 2 : index
    %125 = vector.load %arg6[%c0_63, %c2] : memref<8x8xi32, #tpu.memory_space<vmem>>, vector<8x1xi32>
    %126 = tpu.iota {dimensions = array<i32: 1>} : vector<8x32xi32>
    %127 = vector.broadcast %125 : vector<8x1xi32> to vector<8x32xi32>
    %128 = arith.cmpi eq, %127, %126 : vector<8x32xi32>
    %cst_64 = arith.constant 1.000000e+00 : f32
    %cst_65 = arith.constant 0.000000e+00 : f32
    %129 = vector.broadcast %cst_64 : f32 to vector<8x32xf32>
    %130 = vector.broadcast %cst_65 : f32 to vector<8x32xf32>
    %131 = arith.select %128, %129, %130 : vector<8x32xi1>, vector<8x32xf32>
    %cst_66 = arith.constant dense<0.000000e+00> : vector<8x128xf32>
    %132 = tpu.matmul %131, %1, %cst_66 {dimension_numbers = #tpu.dot_dimension_numbers<[1], [0], [0], [1], [0, 0, 1, 1], [], []>} : vector<8x32xf32>, vector<32x128xf32>, vector<8x128xf32> -> vector<8x128xf32>
    %c0_67 = arith.constant 0 : index
    %c2_68 = arith.constant 2 : index
    %133 = vector.load %arg7[%c0_67, %c2_68] : memref<8x8xi32, #tpu.memory_space<vmem>>, vector<8x1xi32>
    %134 = tpu.iota {dimensions = array<i32: 1>} : vector<8x32xi32>
    %135 = vector.broadcast %133 : vector<8x1xi32> to vector<8x32xi32>
    %136 = arith.cmpi eq, %135, %134 : vector<8x32xi32>
    %cst_69 = arith.constant 1.000000e+00 : f32
    %cst_70 = arith.constant 0.000000e+00 : f32
    %137 = vector.broadcast %cst_69 : f32 to vector<8x32xf32>
    %138 = vector.broadcast %cst_70 : f32 to vector<8x32xf32>
    %139 = arith.select %136, %137, %138 : vector<8x32xi1>, vector<8x32xf32>
    %cst_71 = arith.constant dense<0.000000e+00> : vector<8x128xf32>
    %140 = tpu.matmul %139, %1, %cst_71 {dimension_numbers = #tpu.dot_dimension_numbers<[1], [0], [0], [1], [0, 0, 1, 1], [], []>} : vector<8x32xf32>, vector<32x128xf32>, vector<8x128xf32> -> vector<8x128xf32>
    %141 = arith.addf %132, %27 : vector<8x128xf32>
    %142 = arith.subf %141, %140 : vector<8x128xf32>
    %143 = math.absf %142 : vector<8x128xf32>
    %cst_72 = arith.constant dense<0.000000e+00> : vector<8xf32>
    %144 = vector.multi_reduction <add>, %143, %cst_72 [1] : vector<8x128xf32> to vector<8xf32>
    %145 = vector.shape_cast %144 : vector<8xf32> to vector<8x1xf32>
    %c0_73 = arith.constant 0 : index
    %c2_74 = arith.constant 2 : index
    %146 = vector.load %arg9[%c0_73, %c2_74] : memref<8x8xf32, #tpu.memory_space<vmem>>, vector<8x1xf32>
    tpu.vector_store %arg9[%c0_73, %c2_74], %145 {strides = array<i32>} : memref<8x8xf32, #tpu.memory_space<vmem>>, vector<8x1xf32>,
    %147 = arith.mulf %132, %132 : vector<8x128xf32>
    %cst_75 = arith.constant dense<0.000000e+00> : vector<8xf32>
    %148 = vector.multi_reduction <add>, %147, %cst_75 [1] : vector<8x128xf32> to vector<8xf32>
    %149 = vector.shape_cast %148 : vector<8xf32> to vector<8x1xf32>
    %cst_76 = arith.constant 1.000000e+00 : f32
    %150 = vector.broadcast %cst_76 : f32 to vector<8x1xf32>
    %151 = arith.subf %149, %150 : vector<8x1xf32>
    %cst_77 = arith.constant 0.000000e+00 : f32
    %152 = vector.broadcast %cst_77 : f32 to vector<8x1xf32>
    %153 = arith.maximumf %151, %152 : vector<8x1xf32>
    %154 = arith.addf %124, %153 : vector<8x1xf32>
    %155 = arith.mulf %140, %140 : vector<8x128xf32>
    %cst_78 = arith.constant dense<0.000000e+00> : vector<8xf32>
    %156 = vector.multi_reduction <add>, %155, %cst_78 [1] : vector<8x128xf32> to vector<8xf32>
    %157 = vector.shape_cast %156 : vector<8xf32> to vector<8x1xf32>
    %cst_79 = arith.constant 1.000000e+00 : f32
    %158 = vector.broadcast %cst_79 : f32 to vector<8x1xf32>
    %159 = arith.subf %157, %158 : vector<8x1xf32>
    %cst_80 = arith.constant 0.000000e+00 : f32
    %160 = vector.broadcast %cst_80 : f32 to vector<8x1xf32>
    %161 = arith.maximumf %159, %160 : vector<8x1xf32>
    %162 = arith.addf %154, %161 : vector<8x1xf32>
    %c0_81 = arith.constant 0 : index
    %c3 = arith.constant 3 : index
    %163 = vector.load %arg6[%c0_81, %c3] : memref<8x8xi32, #tpu.memory_space<vmem>>, vector<8x1xi32>
    %164 = tpu.iota {dimensions = array<i32: 1>} : vector<8x32xi32>
    %165 = vector.broadcast %163 : vector<8x1xi32> to vector<8x32xi32>
    %166 = arith.cmpi eq, %165, %164 : vector<8x32xi32>
    %cst_82 = arith.constant 1.000000e+00 : f32
    %cst_83 = arith.constant 0.000000e+00 : f32
    %167 = vector.broadcast %cst_82 : f32 to vector<8x32xf32>
    %168 = vector.broadcast %cst_83 : f32 to vector<8x32xf32>
    %169 = arith.select %166, %167, %168 : vector<8x32xi1>, vector<8x32xf32>
    %cst_84 = arith.constant dense<0.000000e+00> : vector<8x128xf32>
    %170 = tpu.matmul %169, %1, %cst_84 {dimension_numbers = #tpu.dot_dimension_numbers<[1], [0], [0], [1], [0, 0, 1, 1], [], []>} : vector<8x32xf32>, vector<32x128xf32>, vector<8x128xf32> -> vector<8x128xf32>
    %c0_85 = arith.constant 0 : index
    %c3_86 = arith.constant 3 : index
    %171 = vector.load %arg7[%c0_85, %c3_86] : memref<8x8xi32, #tpu.memory_space<vmem>>, vector<8x1xi32>
    %172 = tpu.iota {dimensions = array<i32: 1>} : vector<8x32xi32>
    %173 = vector.broadcast %171 : vector<8x1xi32> to vector<8x32xi32>
    %174 = arith.cmpi eq, %173, %172 : vector<8x32xi32>
    %cst_87 = arith.constant 1.000000e+00 : f32
    %cst_88 = arith.constant 0.000000e+00 : f32
    %175 = vector.broadcast %cst_87 : f32 to vector<8x32xf32>
    %176 = vector.broadcast %cst_88 : f32 to vector<8x32xf32>
    %177 = arith.select %174, %175, %176 : vector<8x32xi1>, vector<8x32xf32>
    %cst_89 = arith.constant dense<0.000000e+00> : vector<8x128xf32>
    %178 = tpu.matmul %177, %1, %cst_89 {dimension_numbers = #tpu.dot_dimension_numbers<[1], [0], [0], [1], [0, 0, 1, 1], [], []>} : vector<8x32xf32>, vector<32x128xf32>, vector<8x128xf32> -> vector<8x128xf32>
    %179 = arith.addf %170, %27 : vector<8x128xf32>
    %180 = arith.subf %179, %178 : vector<8x128xf32>
    %181 = math.absf %180 : vector<8x128xf32>
    %cst_90 = arith.constant dense<0.000000e+00> : vector<8xf32>
    %182 = vector.multi_reduction <add>, %181, %cst_90 [1] : vector<8x128xf32> to vector<8xf32>
    %183 = vector.shape_cast %182 : vector<8xf32> to vector<8x1xf32>
    %c0_91 = arith.constant 0 : index
    %c3_92 = arith.constant 3 : index
    %184 = vector.load %arg9[%c0_91, %c3_92] : memref<8x8xf32, #tpu.memory_space<vmem>>, vector<8x1xf32>
    tpu.vector_store %arg9[%c0_91, %c3_92], %183 {strides = array<i32>} : memref<8x8xf32, #tpu.memory_space<vmem>>, vector<8x1xf32>,
    %185 = arith.mulf %170, %170 : vector<8x128xf32>
    %cst_93 = arith.constant dense<0.000000e+00> : vector<8xf32>
    %186 = vector.multi_reduction <add>, %185, %cst_93 [1] : vector<8x128xf32> to vector<8xf32>
    %187 = vector.shape_cast %186 : vector<8xf32> to vector<8x1xf32>
    %cst_94 = arith.constant 1.000000e+00 : f32
    %188 = vector.broadcast %cst_94 : f32 to vector<8x1xf32>
    %189 = arith.subf %187, %188 : vector<8x1xf32>
    %cst_95 = arith.constant 0.000000e+00 : f32
    %190 = vector.broadcast %cst_95 : f32 to vector<8x1xf32>
    %191 = arith.maximumf %189, %190 : vector<8x1xf32>
    %192 = arith.addf %162, %191 : vector<8x1xf32>
    %193 = arith.mulf %178, %178 : vector<8x128xf32>
    %cst_96 = arith.constant dense<0.000000e+00> : vector<8xf32>
    %194 = vector.multi_reduction <add>, %193, %cst_96 [1] : vector<8x128xf32> to vector<8xf32>
    %195 = vector.shape_cast %194 : vector<8xf32> to vector<8x1xf32>
    %cst_97 = arith.constant 1.000000e+00 : f32
    %196 = vector.broadcast %cst_97 : f32 to vector<8x1xf32>
    %197 = arith.subf %195, %196 : vector<8x1xf32>
    %cst_98 = arith.constant 0.000000e+00 : f32
    %198 = vector.broadcast %cst_98 : f32 to vector<8x1xf32>
    %199 = arith.maximumf %197, %198 : vector<8x1xf32>
    %200 = arith.addf %192, %199 : vector<8x1xf32>
    %c0_99 = arith.constant 0 : index
    %c4 = arith.constant 4 : index
    %201 = vector.load %arg6[%c0_99, %c4] : memref<8x8xi32, #tpu.memory_space<vmem>>, vector<8x1xi32>
    %202 = tpu.iota {dimensions = array<i32: 1>} : vector<8x32xi32>
    %203 = vector.broadcast %201 : vector<8x1xi32> to vector<8x32xi32>
    %204 = arith.cmpi eq, %203, %202 : vector<8x32xi32>
    %cst_100 = arith.constant 1.000000e+00 : f32
    %cst_101 = arith.constant 0.000000e+00 : f32
    %205 = vector.broadcast %cst_100 : f32 to vector<8x32xf32>
    %206 = vector.broadcast %cst_101 : f32 to vector<8x32xf32>
    %207 = arith.select %204, %205, %206 : vector<8x32xi1>, vector<8x32xf32>
    %cst_102 = arith.constant dense<0.000000e+00> : vector<8x128xf32>
    %208 = tpu.matmul %207, %1, %cst_102 {dimension_numbers = #tpu.dot_dimension_numbers<[1], [0], [0], [1], [0, 0, 1, 1], [], []>} : vector<8x32xf32>, vector<32x128xf32>, vector<8x128xf32> -> vector<8x128xf32>
    %c0_103 = arith.constant 0 : index
    %c4_104 = arith.constant 4 : index
    %209 = vector.load %arg7[%c0_103, %c4_104] : memref<8x8xi32, #tpu.memory_space<vmem>>, vector<8x1xi32>
    %210 = tpu.iota {dimensions = array<i32: 1>} : vector<8x32xi32>
    %211 = vector.broadcast %209 : vector<8x1xi32> to vector<8x32xi32>
    %212 = arith.cmpi eq, %211, %210 : vector<8x32xi32>
    %cst_105 = arith.constant 1.000000e+00 : f32
    %cst_106 = arith.constant 0.000000e+00 : f32
    %213 = vector.broadcast %cst_105 : f32 to vector<8x32xf32>
    %214 = vector.broadcast %cst_106 : f32 to vector<8x32xf32>
    %215 = arith.select %212, %213, %214 : vector<8x32xi1>, vector<8x32xf32>
    %cst_107 = arith.constant dense<0.000000e+00> : vector<8x128xf32>
    %216 = tpu.matmul %215, %1, %cst_107 {dimension_numbers = #tpu.dot_dimension_numbers<[1], [0], [0], [1], [0, 0, 1, 1], [], []>} : vector<8x32xf32>, vector<32x128xf32>, vector<8x128xf32> -> vector<8x128xf32>
    %217 = arith.addf %208, %27 : vector<8x128xf32>
    %218 = arith.subf %217, %216 : vector<8x128xf32>
    %219 = math.absf %218 : vector<8x128xf32>
    %cst_108 = arith.constant dense<0.000000e+00> : vector<8xf32>
    %220 = vector.multi_reduction <add>, %219, %cst_108 [1] : vector<8x128xf32> to vector<8xf32>
    %221 = vector.shape_cast %220 : vector<8xf32> to vector<8x1xf32>
    %c0_109 = arith.constant 0 : index
    %c4_110 = arith.constant 4 : index
    %222 = vector.load %arg9[%c0_109, %c4_110] : memref<8x8xf32, #tpu.memory_space<vmem>>, vector<8x1xf32>
    tpu.vector_store %arg9[%c0_109, %c4_110], %221 {strides = array<i32>} : memref<8x8xf32, #tpu.memory_space<vmem>>, vector<8x1xf32>,
    %223 = arith.mulf %208, %208 : vector<8x128xf32>
    %cst_111 = arith.constant dense<0.000000e+00> : vector<8xf32>
    %224 = vector.multi_reduction <add>, %223, %cst_111 [1] : vector<8x128xf32> to vector<8xf32>
    %225 = vector.shape_cast %224 : vector<8xf32> to vector<8x1xf32>
    %cst_112 = arith.constant 1.000000e+00 : f32
    %226 = vector.broadcast %cst_112 : f32 to vector<8x1xf32>
    %227 = arith.subf %225, %226 : vector<8x1xf32>
    %cst_113 = arith.constant 0.000000e+00 : f32
    %228 = vector.broadcast %cst_113 : f32 to vector<8x1xf32>
    %229 = arith.maximumf %227, %228 : vector<8x1xf32>
    %230 = arith.addf %200, %229 : vector<8x1xf32>
    %231 = arith.mulf %216, %216 : vector<8x128xf32>
    %cst_114 = arith.constant dense<0.000000e+00> : vector<8xf32>
    %232 = vector.multi_reduction <add>, %231, %cst_114 [1] : vector<8x128xf32> to vector<8xf32>
    %233 = vector.shape_cast %232 : vector<8xf32> to vector<8x1xf32>
    %cst_115 = arith.constant 1.000000e+00 : f32
    %234 = vector.broadcast %cst_115 : f32 to vector<8x1xf32>
    %235 = arith.subf %233, %234 : vector<8x1xf32>
    %cst_116 = arith.constant 0.000000e+00 : f32
    %236 = vector.broadcast %cst_116 : f32 to vector<8x1xf32>
    %237 = arith.maximumf %235, %236 : vector<8x1xf32>
    %238 = arith.addf %230, %237 : vector<8x1xf32>
    %c0_117 = arith.constant 0 : index
    %c5 = arith.constant 5 : index
    %239 = vector.load %arg6[%c0_117, %c5] : memref<8x8xi32, #tpu.memory_space<vmem>>, vector<8x1xi32>
    %240 = tpu.iota {dimensions = array<i32: 1>} : vector<8x32xi32>
    %241 = vector.broadcast %239 : vector<8x1xi32> to vector<8x32xi32>
    %242 = arith.cmpi eq, %241, %240 : vector<8x32xi32>
    %cst_118 = arith.constant 1.000000e+00 : f32
    %cst_119 = arith.constant 0.000000e+00 : f32
    %243 = vector.broadcast %cst_118 : f32 to vector<8x32xf32>
    %244 = vector.broadcast %cst_119 : f32 to vector<8x32xf32>
    %245 = arith.select %242, %243, %244 : vector<8x32xi1>, vector<8x32xf32>
    %cst_120 = arith.constant dense<0.000000e+00> : vector<8x128xf32>
    %246 = tpu.matmul %245, %1, %cst_120 {dimension_numbers = #tpu.dot_dimension_numbers<[1], [0], [0], [1], [0, 0, 1, 1], [], []>} : vector<8x32xf32>, vector<32x128xf32>, vector<8x128xf32> -> vector<8x128xf32>
    %c0_121 = arith.constant 0 : index
    %c5_122 = arith.constant 5 : index
    %247 = vector.load %arg7[%c0_121, %c5_122] : memref<8x8xi32, #tpu.memory_space<vmem>>, vector<8x1xi32>
    %248 = tpu.iota {dimensions = array<i32: 1>} : vector<8x32xi32>
    %249 = vector.broadcast %247 : vector<8x1xi32> to vector<8x32xi32>
    %250 = arith.cmpi eq, %249, %248 : vector<8x32xi32>
    %cst_123 = arith.constant 1.000000e+00 : f32
    %cst_124 = arith.constant 0.000000e+00 : f32
    %251 = vector.broadcast %cst_123 : f32 to vector<8x32xf32>
    %252 = vector.broadcast %cst_124 : f32 to vector<8x32xf32>
    %253 = arith.select %250, %251, %252 : vector<8x32xi1>, vector<8x32xf32>
    %cst_125 = arith.constant dense<0.000000e+00> : vector<8x128xf32>
    %254 = tpu.matmul %253, %1, %cst_125 {dimension_numbers = #tpu.dot_dimension_numbers<[1], [0], [0], [1], [0, 0, 1, 1], [], []>} : vector<8x32xf32>, vector<32x128xf32>, vector<8x128xf32> -> vector<8x128xf32>
    %255 = arith.addf %246, %27 : vector<8x128xf32>
    %256 = arith.subf %255, %254 : vector<8x128xf32>
    %257 = math.absf %256 : vector<8x128xf32>
    %cst_126 = arith.constant dense<0.000000e+00> : vector<8xf32>
    %258 = vector.multi_reduction <add>, %257, %cst_126 [1] : vector<8x128xf32> to vector<8xf32>
    %259 = vector.shape_cast %258 : vector<8xf32> to vector<8x1xf32>
    %c0_127 = arith.constant 0 : index
    %c5_128 = arith.constant 5 : index
    %260 = vector.load %arg9[%c0_127, %c5_128] : memref<8x8xf32, #tpu.memory_space<vmem>>, vector<8x1xf32>
    tpu.vector_store %arg9[%c0_127, %c5_128], %259 {strides = array<i32>} : memref<8x8xf32, #tpu.memory_space<vmem>>, vector<8x1xf32>,
    %261 = arith.mulf %246, %246 : vector<8x128xf32>
    %cst_129 = arith.constant dense<0.000000e+00> : vector<8xf32>
    %262 = vector.multi_reduction <add>, %261, %cst_129 [1] : vector<8x128xf32> to vector<8xf32>
    %263 = vector.shape_cast %262 : vector<8xf32> to vector<8x1xf32>
    %cst_130 = arith.constant 1.000000e+00 : f32
    %264 = vector.broadcast %cst_130 : f32 to vector<8x1xf32>
    %265 = arith.subf %263, %264 : vector<8x1xf32>
    %cst_131 = arith.constant 0.000000e+00 : f32
    %266 = vector.broadcast %cst_131 : f32 to vector<8x1xf32>
    %267 = arith.maximumf %265, %266 : vector<8x1xf32>
    %268 = arith.addf %238, %267 : vector<8x1xf32>
    %269 = arith.mulf %254, %254 : vector<8x128xf32>
    %cst_132 = arith.constant dense<0.000000e+00> : vector<8xf32>
    %270 = vector.multi_reduction <add>, %269, %cst_132 [1] : vector<8x128xf32> to vector<8xf32>
    %271 = vector.shape_cast %270 : vector<8xf32> to vector<8x1xf32>
    %cst_133 = arith.constant 1.000000e+00 : f32
    %272 = vector.broadcast %cst_133 : f32 to vector<8x1xf32>
    %273 = arith.subf %271, %272 : vector<8x1xf32>
    %cst_134 = arith.constant 0.000000e+00 : f32
    %274 = vector.broadcast %cst_134 : f32 to vector<8x1xf32>
    %275 = arith.maximumf %273, %274 : vector<8x1xf32>
    %276 = arith.addf %268, %275 : vector<8x1xf32>
    %c0_135 = arith.constant 0 : index
    %c6 = arith.constant 6 : index
    %277 = vector.load %arg6[%c0_135, %c6] : memref<8x8xi32, #tpu.memory_space<vmem>>, vector<8x1xi32>
    %278 = tpu.iota {dimensions = array<i32: 1>} : vector<8x32xi32>
    %279 = vector.broadcast %277 : vector<8x1xi32> to vector<8x32xi32>
    %280 = arith.cmpi eq, %279, %278 : vector<8x32xi32>
    %cst_136 = arith.constant 1.000000e+00 : f32
    %cst_137 = arith.constant 0.000000e+00 : f32
    %281 = vector.broadcast %cst_136 : f32 to vector<8x32xf32>
    %282 = vector.broadcast %cst_137 : f32 to vector<8x32xf32>
    %283 = arith.select %280, %281, %282 : vector<8x32xi1>, vector<8x32xf32>
    %cst_138 = arith.constant dense<0.000000e+00> : vector<8x128xf32>
    %284 = tpu.matmul %283, %1, %cst_138 {dimension_numbers = #tpu.dot_dimension_numbers<[1], [0], [0], [1], [0, 0, 1, 1], [], []>} : vector<8x32xf32>, vector<32x128xf32>, vector<8x128xf32> -> vector<8x128xf32>
    %c0_139 = arith.constant 0 : index
    %c6_140 = arith.constant 6 : index
    %285 = vector.load %arg7[%c0_139, %c6_140] : memref<8x8xi32, #tpu.memory_space<vmem>>, vector<8x1xi32>
    %286 = tpu.iota {dimensions = array<i32: 1>} : vector<8x32xi32>
    %287 = vector.broadcast %285 : vector<8x1xi32> to vector<8x32xi32>
    %288 = arith.cmpi eq, %287, %286 : vector<8x32xi32>
    %cst_141 = arith.constant 1.000000e+00 : f32
    %cst_142 = arith.constant 0.000000e+00 : f32
    %289 = vector.broadcast %cst_141 : f32 to vector<8x32xf32>
    %290 = vector.broadcast %cst_142 : f32 to vector<8x32xf32>
    %291 = arith.select %288, %289, %290 : vector<8x32xi1>, vector<8x32xf32>
    %cst_143 = arith.constant dense<0.000000e+00> : vector<8x128xf32>
    %292 = tpu.matmul %291, %1, %cst_143 {dimension_numbers = #tpu.dot_dimension_numbers<[1], [0], [0], [1], [0, 0, 1, 1], [], []>} : vector<8x32xf32>, vector<32x128xf32>, vector<8x128xf32> -> vector<8x128xf32>
    %293 = arith.addf %284, %27 : vector<8x128xf32>
    %294 = arith.subf %293, %292 : vector<8x128xf32>
    %295 = math.absf %294 : vector<8x128xf32>
    %cst_144 = arith.constant dense<0.000000e+00> : vector<8xf32>
    %296 = vector.multi_reduction <add>, %295, %cst_144 [1] : vector<8x128xf32> to vector<8xf32>
    %297 = vector.shape_cast %296 : vector<8xf32> to vector<8x1xf32>
    %c0_145 = arith.constant 0 : index
    %c6_146 = arith.constant 6 : index
    %298 = vector.load %arg9[%c0_145, %c6_146] : memref<8x8xf32, #tpu.memory_space<vmem>>, vector<8x1xf32>
    tpu.vector_store %arg9[%c0_145, %c6_146], %297 {strides = array<i32>} : memref<8x8xf32, #tpu.memory_space<vmem>>, vector<8x1xf32>,
    %299 = arith.mulf %284, %284 : vector<8x128xf32>
    %cst_147 = arith.constant dense<0.000000e+00> : vector<8xf32>
    %300 = vector.multi_reduction <add>, %299, %cst_147 [1] : vector<8x128xf32> to vector<8xf32>
    %301 = vector.shape_cast %300 : vector<8xf32> to vector<8x1xf32>
    %cst_148 = arith.constant 1.000000e+00 : f32
    %302 = vector.broadcast %cst_148 : f32 to vector<8x1xf32>
    %303 = arith.subf %301, %302 : vector<8x1xf32>
    %cst_149 = arith.constant 0.000000e+00 : f32
    %304 = vector.broadcast %cst_149 : f32 to vector<8x1xf32>
    %305 = arith.maximumf %303, %304 : vector<8x1xf32>
    %306 = arith.addf %276, %305 : vector<8x1xf32>
    %307 = arith.mulf %292, %292 : vector<8x128xf32>
    %cst_150 = arith.constant dense<0.000000e+00> : vector<8xf32>
    %308 = vector.multi_reduction <add>, %307, %cst_150 [1] : vector<8x128xf32> to vector<8xf32>
    %309 = vector.shape_cast %308 : vector<8xf32> to vector<8x1xf32>
    %cst_151 = arith.constant 1.000000e+00 : f32
    %310 = vector.broadcast %cst_151 : f32 to vector<8x1xf32>
    %311 = arith.subf %309, %310 : vector<8x1xf32>
    %cst_152 = arith.constant 0.000000e+00 : f32
    %312 = vector.broadcast %cst_152 : f32 to vector<8x1xf32>
    %313 = arith.maximumf %311, %312 : vector<8x1xf32>
    %314 = arith.addf %306, %313 : vector<8x1xf32>
    %c0_153 = arith.constant 0 : index
    %c7 = arith.constant 7 : index
    %315 = vector.load %arg6[%c0_153, %c7] : memref<8x8xi32, #tpu.memory_space<vmem>>, vector<8x1xi32>
    %316 = tpu.iota {dimensions = array<i32: 1>} : vector<8x32xi32>
    %317 = vector.broadcast %315 : vector<8x1xi32> to vector<8x32xi32>
    %318 = arith.cmpi eq, %317, %316 : vector<8x32xi32>
    %cst_154 = arith.constant 1.000000e+00 : f32
    %cst_155 = arith.constant 0.000000e+00 : f32
    %319 = vector.broadcast %cst_154 : f32 to vector<8x32xf32>
    %320 = vector.broadcast %cst_155 : f32 to vector<8x32xf32>
    %321 = arith.select %318, %319, %320 : vector<8x32xi1>, vector<8x32xf32>
    %cst_156 = arith.constant dense<0.000000e+00> : vector<8x128xf32>
    %322 = tpu.matmul %321, %1, %cst_156 {dimension_numbers = #tpu.dot_dimension_numbers<[1], [0], [0], [1], [0, 0, 1, 1], [], []>} : vector<8x32xf32>, vector<32x128xf32>, vector<8x128xf32> -> vector<8x128xf32>
    %c0_157 = arith.constant 0 : index
    %c7_158 = arith.constant 7 : index
    %323 = vector.load %arg7[%c0_157, %c7_158] : memref<8x8xi32, #tpu.memory_space<vmem>>, vector<8x1xi32>
    %324 = tpu.iota {dimensions = array<i32: 1>} : vector<8x32xi32>
    %325 = vector.broadcast %323 : vector<8x1xi32> to vector<8x32xi32>
    %326 = arith.cmpi eq, %325, %324 : vector<8x32xi32>
    %cst_159 = arith.constant 1.000000e+00 : f32
    %cst_160 = arith.constant 0.000000e+00 : f32
    %327 = vector.broadcast %cst_159 : f32 to vector<8x32xf32>
    %328 = vector.broadcast %cst_160 : f32 to vector<8x32xf32>
    %329 = arith.select %326, %327, %328 : vector<8x32xi1>, vector<8x32xf32>
    %cst_161 = arith.constant dense<0.000000e+00> : vector<8x128xf32>
    %330 = tpu.matmul %329, %1, %cst_161 {dimension_numbers = #tpu.dot_dimension_numbers<[1], [0], [0], [1], [0, 0, 1, 1], [], []>} : vector<8x32xf32>, vector<32x128xf32>, vector<8x128xf32> -> vector<8x128xf32>
    %331 = arith.addf %322, %27 : vector<8x128xf32>
    %332 = arith.subf %331, %330 : vector<8x128xf32>
    %333 = math.absf %332 : vector<8x128xf32>
    %cst_162 = arith.constant dense<0.000000e+00> : vector<8xf32>
    %334 = vector.multi_reduction <add>, %333, %cst_162 [1] : vector<8x128xf32> to vector<8xf32>
    %335 = vector.shape_cast %334 : vector<8xf32> to vector<8x1xf32>
    %c0_163 = arith.constant 0 : index
    %c7_164 = arith.constant 7 : index
    %336 = vector.load %arg9[%c0_163, %c7_164] : memref<8x8xf32, #tpu.memory_space<vmem>>, vector<8x1xf32>
    tpu.vector_store %arg9[%c0_163, %c7_164], %335 {strides = array<i32>} : memref<8x8xf32, #tpu.memory_space<vmem>>, vector<8x1xf32>,
    %337 = arith.mulf %322, %322 : vector<8x128xf32>
    %cst_165 = arith.constant dense<0.000000e+00> : vector<8xf32>
    %338 = vector.multi_reduction <add>, %337, %cst_165 [1] : vector<8x128xf32> to vector<8xf32>
    %339 = vector.shape_cast %338 : vector<8xf32> to vector<8x1xf32>
    %cst_166 = arith.constant 1.000000e+00 : f32
    %340 = vector.broadcast %cst_166 : f32 to vector<8x1xf32>
    %341 = arith.subf %339, %340 : vector<8x1xf32>
    %cst_167 = arith.constant 0.000000e+00 : f32
    %342 = vector.broadcast %cst_167 : f32 to vector<8x1xf32>
    %343 = arith.maximumf %341, %342 : vector<8x1xf32>
    %344 = arith.addf %314, %343 : vector<8x1xf32>
    %345 = arith.mulf %330, %330 : vector<8x128xf32>
    %cst_168 = arith.constant dense<0.000000e+00> : vector<8xf32>
    %346 = vector.multi_reduction <add>, %345, %cst_168 [1] : vector<8x128xf32> to vector<8xf32>
    %347 = vector.shape_cast %346 : vector<8xf32> to vector<8x1xf32>
    %cst_169 = arith.constant 1.000000e+00 : f32
    %348 = vector.broadcast %cst_169 : f32 to vector<8x1xf32>
    %349 = arith.subf %347, %348 : vector<8x1xf32>
    %cst_170 = arith.constant 0.000000e+00 : f32
    %350 = vector.broadcast %cst_170 : f32 to vector<8x1xf32>
    %351 = arith.maximumf %349, %350 : vector<8x1xf32>
    %352 = arith.addf %344, %351 : vector<8x1xf32>
    %c0_171 = arith.constant 0 : index
    %c0_172 = arith.constant 0 : index
    %353 = vector.load %arg10[%c0_171, %c0_172] : memref<8x1xf32, #tpu.memory_space<vmem>>, vector<8x1xf32>
    tpu.vector_store %arg10[%c0_171, %c0_172], %352 {strides = array<i32>} : memref<8x1xf32, #tpu.memory_space<vmem>>, vector<8x1xf32>,
    return
  }
  func.func @transform_0(%arg0: i32) -> (i32, i32) {
    %c0_i32 = arith.constant 0 : i32
    %c0_i32_0 = arith.constant 0 : i32
    %c0_i32_1 = arith.constant 0 : i32
    return %c0_i32, %c0_i32_0 : i32, i32
  }
  func.func @transform_1(%arg0: i32) -> (i32, i32) {
    %c0_i32 = arith.constant 0 : i32
    %c0_i32_0 = arith.constant 0 : i32
    %c0_i32_1 = arith.constant 0 : i32
    return %c0_i32, %c0_i32_0 : i32, i32
  }
  func.func @transform_2(%arg0: i32) -> (i32, i32) {
    %c0_i32 = arith.constant 0 : i32
    %c0_i32_0 = arith.constant 0 : i32
    return %arg0, %c0_i32 : i32, i32
  }
  func.func @transform_3(%arg0: i32) -> (i32, i32) {
    %c0_i32 = arith.constant 0 : i32
    %c0_i32_0 = arith.constant 0 : i32
    return %arg0, %c0_i32 : i32, i32
  }
  func.func @transform_4(%arg0: i32) -> (i32, i32) {
    %c0_i32 = arith.constant 0 : i32
    %c0_i32_0 = arith.constant 0 : i32
    return %arg0, %c0_i32 : i32, i32
  }
  func.func @transform_5(%arg0: i32) -> (i32, i32) {
    %c0_i32 = arith.constant 0 : i32
    %c0_i32_0 = arith.constant 0 : i32
    return %arg0, %c0_i32 : i32, i32
  }
  func.func @transform_6(%arg0: i32) -> (i32, i32) {
    %c0_i32 = arith.constant 0 : i32
    %c0_i32_0 = arith.constant 0 : i32
    return %arg0, %c0_i32 : i32, i32
  }
  func.func @transform_7(%arg0: i32) -> (i32, i32) {
    %c0_i32 = arith.constant 0 : i32
    %c0_i32_0 = arith.constant 0 : i32
    return %arg0, %c0_i32 : i32, i32
  }
  func.func @transform_8(%arg0: i32) -> (i32, i32) {
    %c0_i32 = arith.constant 0 : i32
    %c0_i32_0 = arith.constant 0 : i32
    return %arg0, %c0_i32 : i32, i32
  }
  func.func @transform_9(%arg0: i32) -> (i32, i32) {
    %c0_i32 = arith.constant 0 : i32
    %c0_i32_0 = arith.constant 0 : i32
    return %arg0, %c0_i32 : i32, i32
  }
}

</mosaic_0001>

<bundles_post_ra>
// kernel: tpu_custom_call.1
= control target key start
LH: loop header
LB: loop body
LE: loop exit
PB: predicated region body
PF: predicated region fallthrough
CT: control target
= control target key end

     0   :  { %15 = vsyncpa [#allocation3], 0  ;;  %s2575_s0 = inlined_call_operand.vmem [shape: bf16[32,128], index: 0, kind: input, shape index: {}]   ;;  %s2576_s1 = inlined_call_operand.hbm [shape: bf16[8,128], index: 1, kind: input, shape index: {}]   ;;  %s2577_s2 = inlined_call_operand.vmem [shape: s32[8,1], index: 2, kind: input, shape index: {}]   ;;  %s2578_s3 = inlined_call_operand.vmem [shape: s32[8,1], index: 3, kind: input, shape index: {}]   ;;  %s2579_s4 = inlined_call_operand.vmem [shape: s32[8,1], index: 4, kind: input, shape index: {}]   ;;  %s2580_s5 = inlined_call_operand.vmem [shape: s32[8,8], index: 5, kind: input, shape index: {}]   ;;  %s2581_s6 = inlined_call_operand.vmem [shape: s32[8,8], index: 6, kind: input, shape index: {}]   ;;  %s2582_s7 = inlined_call_operand.vmem [shape: f32[8,1], index: 7, kind: output, shape index: {0}]   ;;  %s2583_s8 = inlined_call_operand.hbm [shape: f32[8,8], index: 8, kind: output, shape index: {1}]   ;;  %s2584_s9 = inlined_call_operand.vmem [shape: f32[8,1], index: 9, kind: output, shape index: {2}]  }
   0x1   :  { %16 = vsyncpa [#allocation4], 0  ;;  %s2274_s30 = smov [#allocation2]   ;;  %s2226_s13 = scalar_lea.hbm %s2576_s1, 64 }
   0x2   :  { %s25_s10 = sshll.u32 %s2274_s30, 4  ;;  %p2227_p0 = scmp.ne.s32.totalorder %s2576_s1, %s2226_s13  ;;  %s26_s10 = int_to_ptr.vmem [resolvable:$true] %s25_s10 }
   0x3   :  { %p2230_p1 = scmp.lt.u32.totalorder %s2226_s13, %s2576_s1 }
   0x5   :  { %p2232_p2 = pnand %p2230_p1, %p2227_p0 }
   0x7   :  { %2235 = shalt.err (!%p2232_p2)
}
   0x8   :  { %s2236_s18 = scalar_lea.vmem %s26_s10, 64  ;;  %p2241_p4 = scmp.lt.s32.totalorder %s26_s10, %s26_s10 }
   0x9   :  { %p2237_p3 = scmp.ne.s32.totalorder %s26_s10, %s2236_s18  ;;  %p2242_p5 = scmp.lt.s32.totalorder %s2236_s18, %s2236_s18 }
   0xb   :  { %p2243_p6 = por %p2242_p5, %p2241_p4 }
   0xd   :  { %p2244_p7 = pnand %p2243_p6, %p2237_p3 }
   0xf   :  { %2247 = shalt.err (!%p2244_p7)
}
  0x10   :  { %28 = dma.hbm_to_vmem [thread:$0]  %s2576_s1, 64, %s26_s10, [#allocation3]  }
  0x11   :  { %2270 = dma.done.wait [#allocation3], 64  }
  0x12   :  { %2271 = vsyncadd [#allocation3], 4294967232  ;;  %v2275_v0 = vmov 0   ;;  %v2276_v1 = vmov 0.0|0.0   ;;  %v52_v2 = vld [vmem:[%s2577_s2] sm:$0xff]  ;;  %v2374_v7 = vld [vmem:[%s2575_s0 + $0x8] sm:$0xff]   ;;  %v53_v17 = vlaneseq }
  0x13   :  { %2212 = vset.pattern.permute.xlu0 %v2275_v0  ;;  %2213 = vset.pattern.permute.xlu1 %v2275_v0  ;;  %v213_v3 = vld [vmem:[%s2578_s3] sm:$0xff]  ;;  %vm2277_vm0 = vmmov 0   ;;  %v2278_v8 = vmov 0.0   ;;  %v2279_v10 = vmov 1   ;;  %v2280_v11 = vmov 2  }
  0x14   :  { %2091 = vmatprep.subr.bf16.mxu0 %v2276_v1  ;;  %2097 = vmatprep.subr.bf16.mxu1 %v2276_v1  ;;  %v2360_v4 = vld [vmem:[%s2575_s0] sm:$0xff]   ;;  %v2281_v12 = vmov 3   ;;  %v2282_v13 = vmov 4   ;;  %v2283_v14 = vmov 6   ;;  %v2284_v15 = vmov 5  }
  0x15   :  { %56 = vperm.xlu0 %2212, %v52_v2   ;;  %215 = vperm.xlu1 %2213, %v213_v3   ;;  %v134_v5 = vld [vmem:[%s2579_s4] sm:$0xff]  ;;  %v2285_v16 = vmov 7   ;;  %v2388_v18 = vand.u32 127, %v53_v17  ;;  %vm60_vm1 = vcmask 261120   ;;  %vm219_vm4 = vcmask 64512  }
  0x16   :  { %v311_v6 = vld [vmem:[%s2580_s5] sm:$0xff]  ;;  %2093 = vmatpush3.bf16.msra.mxu0 %v2360_v4  ;;  %2099 = vmatpush3.bf16.msra.mxu1 %v2360_v4 }
  0x17   :  { %2094 = vmatprep.subr.bf16.mxu0 %v2276_v1  ;;  %1896 = vmatprep.mubr.msk.f32.mxu0 %vm2277_vm0, %v2278_v8  ;;  %v390_v9 = vld [vmem:[%s2581_s6] sm:$0xff] }
  0x18   :  { %2100 = vmatprep.subr.bf16.mxu1 %v2276_v1  ;;  %1907 = vmatprep.mubr.msk.f32.mxu1 %vm2277_vm0, %v2278_v8  ;;  %v50_v19 = vld [vmem:[#allocation2] sm:$0xf] }
  0x19   :  { %136 = vperm.xlu0 %2212, %v134_v5   ;;  %313 = vperm.xlu1 %2213, %v311_v6   ;;  %v51_v22 = vunpack.c.l.bf16 %v50_v19 }
  0x1a   :  { %2096 = vmatpush3.bf16.msra.mxu0 %v2374_v7  ;;  %2102 = vmatpush3.bf16.msra.mxu1 %v2374_v7 }
  0x1b   :  { %1910 = vmatprep.subr.mxu0 %v2278_v8  ;;  %2103 = vmatprep.subr.bf16.mxu1 %v2276_v1 }
  0x1d   :  { %392 = vperm.xlu0 %2212, %v390_v9   ;;  %2214 = vset.pattern.permute.xlu1 %v2279_v10 }
  0x1e   :  { %489 = vperm.xlu1 %2214, %v311_v6  }
  0x21   :  { %2215 = vset.pattern.permute.xlu0 %v2279_v10 }
  0x22   :  { %568 = vperm.xlu0 %2215, %v390_v9   ;;  %2216 = vset.pattern.permute.xlu1 %v2280_v11 }
  0x23   :  { %666 = vperm.xlu1 %2216, %v311_v6  }
  0x26   :  { %2217 = vset.pattern.permute.xlu0 %v2281_v12 }
  0x27   :  { %745 = vperm.xlu1 %2216, %v390_v9   ;;  %843 = vperm.xlu0 %2217, %v311_v6  }
  0x2b   :  { %2218 = vset.pattern.permute.xlu1 %v2281_v12  ;;  %2220 = vset.pattern.permute.xlu0 %v2282_v13 }
  0x2c   :  { %922 = vperm.xlu1 %2218, %v390_v9   ;;  %1099 = vperm.xlu0 %2220, %v390_v9  }
  0x30   :  { %2219 = vset.pattern.permute.xlu1 %v2282_v13  ;;  %2222 = vset.pattern.permute.xlu0 %v2283_v14 }
  0x31   :  { %1020 = vperm.xlu1 %2219, %v311_v6   ;;  %1374 = vperm.xlu0 %2222, %v311_v6  }
  0x35   :  { %2221 = vset.pattern.permute.xlu1 %v2284_v15  ;;  %2225 = vset.pattern.permute.xlu0 %v2285_v16 }
  0x36   :  { %1197 = vperm.xlu1 %2221, %v311_v6   ;;  %1630 = vperm.xlu0 %2225, %v390_v9  }
  0x3a   :  { %1276 = vperm.xlu1 %2221, %v390_v9  }
  0x3e   :  { %2223 = vset.pattern.permute.xlu1 %v2283_v14 }
  0x3f   :  { %1453 = vperm.xlu1 %2223, %v390_v9  }
  0x43   :  { %2224 = vset.pattern.permute.xlu1 %v2285_v16 }
  0x44   :  { %1551 = vperm.xlu1 %2224, %v311_v6  }
  0x94   :  { %v57_v20 = vpop.permute.xlu0 %56  ;;  %v216_v21 = vpop.permute.xlu1 %215 }
  0x95   :  { %vm58_vm2 = vcmp.eq.s32.totalorder %v57_v20, %v2388_v18  ;;  %vm217_vm3 = vcmp.eq.s32.totalorder %v216_v21, %v2388_v18 }
  0x96   :  { %v59_v23 = vsel %vm58_vm2, 1.0, %v2278_v8  ;;  %v218_v24 = vsel %vm217_vm3, 1.0, %v2278_v8 }
  0x97   :  { %1897 = vmatmul.mubr.msk.f32.vlgmr.msra.gmra.mrb[0].mxu0 %vm60_vm1, %v59_v23 }
  0x98   :  { %v137_v25 = vpop.permute.xlu0 %136  ;;  %1911 = vmatpush3.msra.mxu0 %v51_v22  ;;  %1912 = vmatprep.mubr.msk.f32.mxu0 %vm2277_vm0, %v2278_v8  ;;  %v314_v27 = vpop.permute.xlu1 %313 }
  0x99   :  { %vm138_vm5 = vcmp.eq.s32.totalorder %v137_v25, %v2388_v18  ;;  %2109 = vmatprep.subr.bf16.mxu0 %v2276_v1  ;;  %vm315_vm6 = vcmp.eq.s32.totalorder %v314_v27, %v2388_v18 }
  0x9a   :  { %v139_v26 = vsel %vm138_vm5, 1.0, %v2278_v8  ;;  %v316_v30 = vsel %vm315_vm6, 1.0, %v2278_v8 }
  0x9b   :  { %1908 = vmatmul.mubr.msk.f32.vlgmr.msra.gmra.mrb[0].mxu1 %vm60_vm1, %v139_v26  ;;  %1913 = vmatmul.mubr.msk.f32.vlgmr.msra.gmra.mrb[2].mxu0 %vm219_vm4, %v218_v24 }
  0x9c   :  { %2105 = vmatpush3.bf16.msra.mxu1 %v2360_v4  ;;  %2111 = vmatpush3.bf16.msra.mxu0 %v2360_v4  ;;  %v393_v28 = vpop.permute.xlu0 %392 }
  0x9d   :  { %2106 = vmatprep.subr.bf16.mxu1 %v2276_v1  ;;  %2112 = vmatprep.subr.bf16.mxu0 %v2276_v1  ;;  %v490_v29 = vpop.permute.xlu1 %489  ;;  %vm394_vm7 = vcmp.eq.s32.totalorder %v393_v28, %v2388_v18 }
  0x9e   :  { %1923 = vmatprep.mubr.msk.f32.mxu1 %vm2277_vm0, %v2278_v8  ;;  %1934 = vmatprep.mubr.msk.f32.mxu0 %vm2277_vm0, %v2278_v8  ;;  %v395_v31 = vsel %vm394_vm7, 1.0, %v2278_v8  ;;  %vm491_vm8 = vcmp.eq.s32.totalorder %v490_v29, %v2388_v18 }
  0x9f   :  { %v492_v34 = vsel %vm491_vm8, 1.0, %v2278_v8  ;;  %vm827_vm8 = vcmask 23568  }
  0xa0   :  { %2108 = vmatpush3.bf16.msra.mxu1 %v2374_v7  ;;  %2114 = vmatpush3.bf16.msra.mxu0 %v2374_v7 }
  0xa1   :  { %2115 = vmatprep.subr.bf16.mxu1 %v2276_v1  ;;  %2121 = vmatprep.subr.bf16.mxu0 %v2276_v1  ;;  %v569_v32 = vpop.permute.xlu0 %568 }
  0xa2   :  { %v667_v33 = vpop.permute.xlu1 %666  ;;  %vm570_vm9 = vcmp.eq.s32.totalorder %v569_v32, %v2388_v18 }
  0xa3   :  { %1924 = vmatmul.mubr.msk.f32.vlgmr.msra.gmra.mrb[2].mxu1 %vm60_vm1, %v316_v30  ;;  %1935 = vmatmul.mubr.msk.f32.vlgmr.msra.gmra.mrb[4].mxu0 %vm60_vm1, %v395_v31  ;;  %v571_v35 = vsel %vm570_vm9, 1.0, %v2278_v8  ;;  %vm668_vm10 = vcmp.eq.s32.totalorder %v667_v33, %v2388_v18  ;;  %vm1004_vm9 = vcmask 31768  }
  0xa4   :  { %2117 = vmatpush3.bf16.msra.mxu1 %v2360_v4  ;;  %2123 = vmatpush3.bf16.msra.mxu0 %v2360_v4  ;;  %v669_v37 = vsel %vm668_vm10, 1.0, %v2278_v8  ;;  %vm1181_vm10 = vcmask 39968  }
  0xa5   :  { %2118 = vmatprep.subr.bf16.mxu1 %v2276_v1  ;;  %2124 = vmatprep.subr.bf16.mxu0 %v2276_v1 }
  0xa6   :  { %1945 = vmatprep.mubr.msk.f32.mxu1 %vm2277_vm0, %v2278_v8  ;;  %1956 = vmatprep.mubr.msk.f32.mxu0 %vm2277_vm0, %v2278_v8  ;;  %v746_v36 = vpop.permute.xlu1 %745  ;;  %v844_v40 = vpop.permute.xlu0 %843 }
  0xa7   :  { %vm747_vm11 = vcmp.eq.s32.totalorder %v746_v36, %v2388_v18  ;;  %vm845_vm13 = vcmp.eq.s32.totalorder %v844_v40, %v2388_v18 }
  0xa8   :  { %2120 = vmatpush3.bf16.msra.mxu1 %v2374_v7  ;;  %2126 = vmatpush3.bf16.msra.mxu0 %v2374_v7  ;;  %v748_v38 = vsel %vm747_vm11, 1.0, %v2278_v8  ;;  %v846_v43 = vsel %vm845_vm13, 1.0, %v2278_v8  ;;  %vm1358_vm11 = vcmask 48168   ;;  %vm1712_vm13 = vcmask 64568  }
  0xa9   :  { %2127 = vmatprep.subr.bf16.mxu1 %v2276_v1  ;;  %2133 = vmatprep.subr.bf16.mxu0 %v2276_v1 }
  0xab   :  { %1946 = vmatmul.mubr.msk.f32.vlgmr.msra.gmra.mrb[4].mxu1 %vm60_vm1, %v492_v34  ;;  %1957 = vmatmul.mubr.msk.f32.vlgmr.msra.gmra.mrb[6].mxu0 %vm60_vm1, %v571_v35  ;;  %v923_v39 = vpop.permute.xlu1 %922  ;;  %v1100_v44 = vpop.permute.xlu0 %1099 }
  0xac   :  { %2129 = vmatpush3.bf16.msra.mxu1 %v2360_v4  ;;  %2135 = vmatpush3.bf16.msra.mxu0 %v2360_v4  ;;  %vm924_vm12 = vcmp.eq.s32.totalorder %v923_v39, %v2388_v18  ;;  %vm1101_vm15 = vcmp.eq.s32.totalorder %v1100_v44, %v2388_v18 }
  0xad   :  { %2130 = vmatprep.subr.bf16.mxu1 %v2276_v1  ;;  %2136 = vmatprep.subr.bf16.mxu0 %v2276_v1  ;;  %v925_v42 = vsel %vm924_vm12, 1.0, %v2278_v8  ;;  %v1102_v47 = vsel %vm1101_vm15, 1.0, %v2278_v8  ;;  %vm1535_vm12 = vcmask 56368  }
  0xae   :  { %1967 = vmatprep.mubr.msk.f32.mxu1 %vm2277_vm0, %v2278_v8  ;;  %1978 = vmatprep.mubr.msk.f32.mxu0 %vm2277_vm0, %v2278_v8 }
  0xb0   :  { %2132 = vmatpush3.bf16.msra.mxu1 %v2374_v7  ;;  %2138 = vmatpush3.bf16.msra.mxu0 %v2374_v7  ;;  %v1021_v41 = vpop.permute.xlu1 %1020  ;;  %v1375_v52 = vpop.permute.xlu0 %1374 }
  0xb1   :  { %2139 = vmatprep.subr.bf16.mxu1 %v2276_v1  ;;  %2145 = vmatprep.subr.bf16.mxu0 %v2276_v1  ;;  %vm1022_vm14 = vcmp.eq.s32.totalorder %v1021_v41, %v2388_v18  ;;  %vm1376_vm5 = vcmp.eq.s32.totalorder %v1375_v52, %v2388_v18 }
  0xb2   :  { %v1023_v46 = vsel %vm1022_vm14, 1.0, %v2278_v8  ;;  %v1377_v54 = vsel %vm1376_vm5, 1.0, %v2278_v8 }
  0xb3   :  { %1968 = vmatmul.mubr.msk.f32.vlgmr.msra.gmra.mrb[6].mxu1 %vm60_vm1, %v669_v37  ;;  %1979 = vmatmul.mubr.msk.f32.vlgmr.msra.gmra.mrb[8].mxu0 %vm60_vm1, %v748_v38 }
  0xb4   :  { %2141 = vmatpush3.bf16.msra.mxu1 %v2360_v4  ;;  %2147 = vmatpush3.bf16.msra.mxu0 %v2360_v4 }
  0xb5   :  { %2142 = vmatprep.subr.bf16.mxu1 %v2276_v1  ;;  %2148 = vmatprep.subr.bf16.mxu0 %v2276_v1  ;;  %v1198_v45 = vpop.permute.xlu1 %1197  ;;  %v1631_v56 = vpop.permute.xlu0 %1630 }
  0xb6   :  { %1989 = vmatprep.mubr.msk.f32.mxu1 %vm2277_vm0, %v2278_v8  ;;  %2000 = vmatprep.mubr.msk.f32.mxu0 %vm2277_vm0, %v2278_v8  ;;  %vm1199_vm2 = vcmp.eq.s32.totalorder %v1198_v45, %v2388_v18  ;;  %vm1632_vm7 = vcmp.eq.s32.totalorder %v1631_v56, %v2388_v18 }
  0xb7   :  { %v1200_v49 = vsel %vm1199_vm2, 1.0, %v2278_v8  ;;  %v1633_v58 = vsel %vm1632_vm7, 1.0, %v2278_v8 }
  0xb8   :  { %2144 = vmatpush3.bf16.msra.mxu1 %v2374_v7  ;;  %2150 = vmatpush3.bf16.msra.mxu0 %v2374_v7 }
  0xb9   :  { %2151 = vmatprep.subr.bf16.mxu1 %v2276_v1  ;;  %2157 = vmatprep.subr.bf16.mxu0 %v2276_v1  ;;  %v1277_v48 = vpop.permute.xlu1 %1276 }
  0xba   :  { %vm1278_vm3 = vcmp.eq.s32.totalorder %v1277_v48, %v2388_v18 }
  0xbb   :  { %1990 = vmatmul.mubr.msk.f32.vlgmr.msra.gmra.mrb[8].mxu1 %vm60_vm1, %v846_v43  ;;  %2001 = vmatmul.mubr.msk.f32.vlgmr.msra.gmra.mrb[10].mxu0 %vm60_vm1, %v925_v42  ;;  %v1279_v50 = vsel %vm1278_vm3, 1.0, %v2278_v8 }
  0xbc   :  { %2153 = vmatpush3.bf16.msra.mxu1 %v2360_v4  ;;  %2159 = vmatpush3.bf16.msra.mxu0 %v2360_v4 }
  0xbd   :  { %2154 = vmatprep.subr.bf16.mxu1 %v2276_v1  ;;  %2160 = vmatprep.subr.bf16.mxu0 %v2276_v1 }
  0xbe   :  { %2011 = vmatprep.mubr.msk.f32.mxu1 %vm2277_vm0, %v2278_v8  ;;  %2022 = vmatprep.mubr.msk.f32.mxu0 %vm2277_vm0, %v2278_v8  ;;  %v1454_v51 = vpop.permute.xlu1 %1453 }
  0xbf   :  { %vm1455_vm4 = vcmp.eq.s32.totalorder %v1454_v51, %v2388_v18 }
  0xc0   :  { %2156 = vmatpush3.bf16.msra.mxu1 %v2374_v7  ;;  %2162 = vmatpush3.bf16.msra.mxu0 %v2374_v7  ;;  %v1456_v53 = vsel %vm1455_vm4, 1.0, %v2278_v8 }
  0xc1   :  { %2163 = vmatprep.subr.bf16.mxu1 %v2276_v1  ;;  %2169 = vmatprep.subr.bf16.mxu0 %v2276_v1 }
  0xc3   :  { %2012 = vmatmul.mubr.msk.f32.vlgmr.msra.gmra.mrb[10].mxu1 %vm60_vm1, %v1023_v46  ;;  %2023 = vmatmul.mubr.msk.f32.vlgmr.msra.gmra.mrb[12].mxu0 %vm60_vm1, %v1102_v47  ;;  %v1552_v55 = vpop.permute.xlu1 %1551 }
  0xc4   :  { %2165 = vmatpush3.bf16.msra.mxu1 %v2360_v4  ;;  %2171 = vmatpush3.bf16.msra.mxu0 %v2360_v4  ;;  %vm1553_vm6 = vcmp.eq.s32.totalorder %v1552_v55, %v2388_v18 }
  0xc5   :  { %2166 = vmatprep.subr.bf16.mxu1 %v2276_v1  ;;  %2172 = vmatprep.subr.bf16.mxu0 %v2276_v1  ;;  %v1554_v57 = vsel %vm1553_vm6, 1.0, %v2278_v8 }
  0xc6   :  { %2033 = vmatprep.mubr.msk.f32.mxu1 %vm2277_vm0, %v2278_v8  ;;  %2044 = vmatprep.mubr.msk.f32.mxu0 %vm2277_vm0, %v2278_v8 }
  0xc8   :  { %2168 = vmatpush3.bf16.msra.mxu1 %v2374_v7  ;;  %2174 = vmatpush3.bf16.msra.mxu0 %v2374_v7 }
  0xc9   :  { %2175 = vmatprep.subr.bf16.mxu1 %v2276_v1  ;;  %2181 = vmatprep.subr.bf16.mxu0 %v2276_v1 }
  0xcb   :  { %2034 = vmatmul.mubr.msk.f32.vlgmr.msra.gmra.mrb[12].mxu1 %vm60_vm1, %v1200_v49  ;;  %2045 = vmatmul.mubr.msk.f32.vlgmr.msra.gmra.mrb[14].mxu0 %vm60_vm1, %v1279_v50 }
  0xcc   :  { %2177 = vmatpush3.bf16.msra.mxu1 %v2360_v4  ;;  %2183 = vmatpush3.bf16.msra.mxu0 %v2360_v4 }
  0xcd   :  { %2178 = vmatprep.subr.bf16.mxu1 %v2276_v1  ;;  %2184 = vmatprep.subr.bf16.mxu0 %v2276_v1 }
  0xce   :  { %2055 = vmatprep.mubr.msk.f32.mxu1 %vm2277_vm0, %v2278_v8  ;;  %2066 = vmatprep.mubr.msk.f32.mxu0 %vm2277_vm0, %v2278_v8 }
  0xd0   :  { %2180 = vmatpush3.bf16.msra.mxu1 %v2374_v7  ;;  %2186 = vmatpush3.bf16.msra.mxu0 %v2374_v7 }
  0xd1   :  { %2187 = vmatprep.subr.bf16.mxu1 %v2276_v1  ;;  %2193 = vmatprep.subr.bf16.mxu0 %v2276_v1 }
  0xd3   :  { %2056 = vmatmul.mubr.msk.f32.vlgmr.msra.gmra.mrb[14].mxu1 %vm60_vm1, %v1377_v54  ;;  %2067 = vmatmul.mubr.msk.f32.vlgmr.msra.gmra.mrb[16].mxu0 %vm60_vm1, %v1456_v53 }
  0xd4   :  { %2189 = vmatpush3.bf16.msra.mxu1 %v2360_v4  ;;  %2195 = vmatpush3.bf16.msra.mxu0 %v2360_v4 }
  0xd5   :  { %2190 = vmatprep.subr.bf16.mxu1 %v2276_v1  ;;  %2196 = vmatprep.subr.bf16.mxu0 %v2276_v1 }
  0xd6   :  { %2077 = vmatprep.mubr.msk.f32.mxu1 %vm2277_vm0, %v2278_v8  ;;  %2088 = vmatprep.mubr.msk.f32.mxu0 %vm2277_vm0, %v2278_v8  ;;  %vm298_vm0 = vcmask 7168  }
  0xd8   :  { %2192 = vmatpush3.bf16.msra.mxu1 %v2374_v7  ;;  %2198 = vmatpush3.bf16.msra.mxu0 %v2374_v7 }
  0xdb   :  { %2078 = vmatmul.mubr.msk.f32.vlgmr.msra.gmra.mrb[16].mxu1 %vm60_vm1, %v1554_v57  ;;  %2089 = vmatmul.mubr.msk.f32.vlgmr.msra.gmra.mrb[18].mxu0 %vm60_vm1, %v1633_v58  ;;  %vm650_vm1 = vcmask 15368  }
 0x16a   :  { %v130_v59 = vpop.f32.mrb[0].mxu0 }
 0x16b   :  { %v1898_v60 = vpop.f32.mrb[1].mxu0  ;;  %v300_v61 = vmul.f32 %v130_v59, %v130_v59 }
 0x16d   :  { %301 = vadd.xlane.f32.xlu0 %v300_v61 }
 0x16e   :  { %v209_v62 = vpop.f32.mrb[0].mxu1  ;;  %v2543_v63 = vpop.f32.mrb[2].mxu0 }
 0x16f   :  { %v1909_v0 = vpop.f32.mrb[1].mxu1  ;;  %v1914_v1 = vpop.f32.mrb[3].mxu0  ;;  %v305_v2 = vmul.f32 %v209_v62, %v209_v62  ;;  %v293_v3 = vadd.f32 %v2543_v63, %v130_v59 }
 0x171   :  { %306 = vadd.xlane.f32.xlu1 %v305_v2  ;;  %v294_v4 = vsub.f32 %v293_v3, %v209_v62 }
 0x173   :  { %v295_v13 = vand.u32 2147483647, %v294_v4 }
 0x176   :  { %v386_v5 = vpop.f32.mrb[2].mxu1  ;;  %v465_v6 = vpop.f32.mrb[4].mxu0 }
 0x177   :  { %v469_v7 = vadd.f32 %v386_v5, %v2543_v63  ;;  %v1925_v8 = vpop.f32.mrb[3].mxu1  ;;  %v1936_v9 = vpop.f32.mrb[5].mxu0  ;;  %v475_v10 = vmul.f32 %v386_v5, %v386_v5  ;;  %v481_v11 = vmul.f32 %v465_v6, %v465_v6 }
 0x179   :  { %v470_v12 = vsub.f32 %v469_v7, %v465_v6  ;;  %476 = vadd.xlane.f32.xlu1 %v475_v10  ;;  %482 = vadd.xlane.f32.xlu0 %v481_v11 }
 0x17b   :  { %v471_v14 = vand.u32 2147483647, %v470_v12 }
 0x17d   :  { %296 = vadd.xlane.f32.xlu1 %v295_v13  ;;  %472 = vadd.xlane.f32.xlu0 %v471_v14 }
 0x17e   :  { %v562_v15 = vpop.f32.mrb[4].mxu1  ;;  %v641_v16 = vpop.f32.mrb[6].mxu0 }
 0x17f   :  { %v645_v17 = vadd.f32 %v562_v15, %v2543_v63  ;;  %v1947_v18 = vpop.f32.mrb[5].mxu1  ;;  %v652_v19 = vmul.f32 %v562_v15, %v562_v15  ;;  %v658_v20 = vmul.f32 %v641_v16, %v641_v16  ;;  %v1958_v21 = vpop.f32.mrb[7].mxu0 }
 0x181   :  { %v646_v22 = vsub.f32 %v645_v17, %v641_v16  ;;  %653 = vadd.xlane.f32.xlu0 %v652_v19  ;;  %659 = vadd.xlane.f32.xlu1 %v658_v20 }
 0x183   :  { %v647_v23 = vand.u32 2147483647, %v646_v22 }
 0x185   :  { %648 = vadd.xlane.f32.xlu1 %v647_v23 }
 0x186   :  { %v739_v24 = vpop.f32.mrb[6].mxu1  ;;  %v818_v25 = vpop.f32.mrb[8].mxu0 }
 0x187   :  { %v822_v26 = vadd.f32 %v739_v24, %v2543_v63  ;;  %v1969_v27 = vpop.f32.mrb[7].mxu1  ;;  %v1980_v28 = vpop.f32.mrb[9].mxu0  ;;  %v829_v29 = vmul.f32 %v739_v24, %v739_v24  ;;  %v835_v30 = vmul.f32 %v818_v25, %v818_v25 }
 0x189   :  { %v823_v31 = vsub.f32 %v822_v26, %v818_v25  ;;  %830 = vadd.xlane.f32.xlu1 %v829_v29  ;;  %836 = vadd.xlane.f32.xlu0 %v835_v30 }
 0x18b   :  { %v824_v32 = vand.u32 2147483647, %v823_v31 }
 0x18d   :  { %825 = vadd.xlane.f32.xlu0 %v824_v32 }
 0x18e   :  { %v916_v33 = vpop.f32.mrb[8].mxu1  ;;  %v995_v34 = vpop.f32.mrb[10].mxu0 }
 0x18f   :  { %v999_v35 = vadd.f32 %v916_v33, %v2543_v63  ;;  %v1991_v36 = vpop.f32.mrb[9].mxu1  ;;  %v1006_v37 = vmul.f32 %v916_v33, %v916_v33  ;;  %v1012_v38 = vmul.f32 %v995_v34, %v995_v34  ;;  %v2002_v39 = vpop.f32.mrb[11].mxu0 }
 0x191   :  { %v1000_v40 = vsub.f32 %v999_v35, %v995_v34  ;;  %1007 = vadd.xlane.f32.xlu0 %v1006_v37  ;;  %1013 = vadd.xlane.f32.xlu1 %v1012_v38 }
 0x193   :  { %v1001_v41 = vand.u32 2147483647, %v1000_v40 }
 0x195   :  { %1002 = vadd.xlane.f32.xlu1 %v1001_v41 }
 0x196   :  { %v1093_v42 = vpop.f32.mrb[10].mxu1  ;;  %v1172_v43 = vpop.f32.mrb[12].mxu0 }
 0x197   :  { %v1176_v44 = vadd.f32 %v1093_v42, %v2543_v63  ;;  %v2013_v45 = vpop.f32.mrb[11].mxu1  ;;  %v1183_v46 = vmul.f32 %v1093_v42, %v1093_v42  ;;  %v1189_v47 = vmul.f32 %v1172_v43, %v1172_v43  ;;  %v2024_v48 = vpop.f32.mrb[13].mxu0 }
 0x199   :  { %v1177_v49 = vsub.f32 %v1176_v44, %v1172_v43  ;;  %1184 = vadd.xlane.f32.xlu1 %v1183_v46  ;;  %1190 = vadd.xlane.f32.xlu0 %v1189_v47 }
 0x19b   :  { %v1178_v50 = vand.u32 2147483647, %v1177_v49 }
 0x19d   :  { %1179 = vadd.xlane.f32.xlu0 %v1178_v50 }
 0x19e   :  { %v1270_v51 = vpop.f32.mrb[12].mxu1  ;;  %v1349_v52 = vpop.f32.mrb[14].mxu0 }
 0x19f   :  { %v1353_v53 = vadd.f32 %v1270_v51, %v2543_v63  ;;  %v2035_v54 = vpop.f32.mrb[13].mxu1  ;;  %v2046_v55 = vpop.f32.mrb[15].mxu0  ;;  %v1360_v56 = vmul.f32 %v1270_v51, %v1270_v51  ;;  %v1366_v57 = vmul.f32 %v1349_v52, %v1349_v52 }
 0x1a1   :  { %v1354_v58 = vsub.f32 %v1353_v53, %v1349_v52  ;;  %1361 = vadd.xlane.f32.xlu0 %v1360_v56  ;;  %1367 = vadd.xlane.f32.xlu1 %v1366_v57 }
 0x1a3   :  { %v1355_v59 = vand.u32 2147483647, %v1354_v58 }
 0x1a5   :  { %1356 = vadd.xlane.f32.xlu1 %v1355_v59 }
 0x1a6   :  { %v1447_v60 = vpop.f32.mrb[14].mxu1  ;;  %v1526_v61 = vpop.f32.mrb[16].mxu0 }
 0x1a7   :  { %v1530_v62 = vadd.f32 %v1447_v60, %v2543_v63  ;;  %v2057_v0 = vpop.f32.mrb[15].mxu1  ;;  %v1537_v1 = vmul.f32 %v1447_v60, %v1447_v60  ;;  %v1543_v2 = vmul.f32 %v1526_v61, %v1526_v61  ;;  %v2068_v3 = vpop.f32.mrb[17].mxu0 }
 0x1a9   :  { %v1531_v4 = vsub.f32 %v1530_v62, %v1526_v61  ;;  %1538 = vadd.xlane.f32.xlu1 %v1537_v1  ;;  %1544 = vadd.xlane.f32.xlu0 %v1543_v2 }
 0x1ab   :  { %v1532_v5 = vand.u32 2147483647, %v1531_v4 }
 0x1ad   :  { %1533 = vadd.xlane.f32.xlu0 %v1532_v5 }
 0x1ae   :  { %v1624_v6 = vpop.f32.mrb[16].mxu1  ;;  %v1703_v7 = vpop.f32.mrb[18].mxu0 }
 0x1af   :  { %v1707_v8 = vadd.f32 %v1624_v6, %v2543_v63  ;;  %v2079_v9 = vpop.f32.mrb[17].mxu1  ;;  %v2090_v10 = vpop.f32.mrb[19].mxu0  ;;  %v1714_v11 = vmul.f32 %v1624_v6, %v1624_v6  ;;  %v1720_v14 = vmul.f32 %v1703_v7, %v1703_v7 }
 0x1b1   :  { %v1708_v12 = vsub.f32 %v1707_v8, %v1703_v7  ;;  %1715 = vadd.xlane.f32.xlu0 %v1714_v11 }
 0x1b3   :  { %v1709_v13 = vand.u32 2147483647, %v1708_v12 }
 0x1b5   :  { %1710 = vadd.xlane.f32.xlu1 %v1709_v13 }
 0x1b9   :  { %1721 = vadd.xlane.f32.xlu1 %v1720_v14 }
 0x1fa   :  { %v302_v15 = vpop.xlane.xlu0 %301 }
 0x1fb   :  { %v1753_v25 = vadd.f32 -1.0, %v302_v15 }
 0x1fd   :  { %v304_v30 = vmax.f32 %v1753_v25, 0.0 }
 0x1fe   :  { %v307_v16 = vpop.xlane.xlu1 %306 }
 0x1ff   :  { %v1754_v23 = vadd.f32 -1.0, %v307_v16 }
 0x201   :  { %v309_v27 = vmax.f32 %v1754_v23, 0.0 }
 0x203   :  { %v310_v32 = vadd.f32 %v309_v27, %v304_v30 }
 0x206   :  { %v477_v17 = vpop.xlane.xlu1 %476  ;;  %v483_v18 = vpop.xlane.xlu0 %482 }
 0x207   :  { %v1757_v26 = vadd.f32 -1.0, %v477_v17  ;;  %v1758_v33 = vadd.f32 -1.0, %v483_v18 }
 0x209   :  { %v479_v31 = vmax.f32 %v1757_v26, 0.0  ;;  %v485_v37 = vmax.f32 %v1758_v33, 0.0 }
 0x20a   :  { %v297_v19 = vpop.xlane.xlu1 %296  ;;  %v473_v20 = vpop.xlane.xlu0 %472 }
 0x20b   :  { %299 = vst.msk [vmem:[%s2582_s7] sm:$0xff] %vm298_vm0, %v297_v19  ;;  %474 = vst.msk [vmem:[#allocation5] sm:$0xff] %vm298_vm0, %v473_v20  ;;  %v480_v36 = vadd.f32 %v479_v31, %v310_v32  ;;  %s2286_s7 = smov [#allocation5]  }
 0x20c   :  { %s1735_s30 = sshll.u32 %s2286_s7, 4  ;;  %s1736_s30 = int_to_ptr.vmem [resolvable:$true] %s1735_s30 }
 0x20d   :  { %v486_v42 = vadd.f32 %v485_v37, %v480_v36  ;;  %s2248_s10 = scalar_lea.vmem %s1736_s30, 128  ;;  %p2253_p9 = scmp.lt.s32.totalorder %s1736_s30, %s1736_s30 }
 0x20e   :  { %v660_v63 = vpop.xlane.xlu1 %659  ;;  %v654_v21 = vpop.xlane.xlu0 %653  ;;  %p2249_p8 = scmp.ne.s32.totalorder %s1736_s30, %s2248_s10  ;;  %p2254_p10 = scmp.lt.s32.totalorder %s2248_s10, %s2248_s10 }
 0x20f   :  { %v1761_v34 = vadd.f32 -1.0, %v654_v21  ;;  %v1762_v39 = vadd.f32 -1.0, %v660_v63 }
 0x210   :  { %p2255_p11 = por %p2254_p10, %p2253_p9 }
 0x211   :  { %v656_v38 = vmax.f32 %v1761_v34, 0.0  ;;  %v662_v45 = vmax.f32 %v1762_v39, 0.0 }
 0x212   :  { %v649_v22 = vpop.xlane.xlu1 %648  ;;  %p2256_p12 = pnand %p2255_p11, %p2249_p8 }
 0x213   :  { %651 = vst.msk [vmem:[#allocation5] sm:$0xff] %vm650_vm1, %v649_v22  ;;  %v657_v44 = vadd.f32 %v656_v38, %v486_v42 }
 0x215   :  { %v663_v48 = vadd.f32 %v662_v45, %v657_v44 }
 0x216   :  { %v837_v24 = vpop.xlane.xlu0 %836  ;;  %v831_v28 = vpop.xlane.xlu1 %830 }
 0x217   :  { %v1765_v43 = vadd.f32 -1.0, %v831_v28  ;;  %v1766_v49 = vadd.f32 -1.0, %v837_v24 }
 0x219   :  { %v833_v47 = vmax.f32 %v1765_v43, 0.0  ;;  %v839_v54 = vmax.f32 %v1766_v49, 0.0 }
 0x21a   :  { %v826_v29 = vpop.xlane.xlu0 %825 }
 0x21b   :  { %828 = vst.msk [vmem:[#allocation5] sm:$0xff] %vm827_vm8, %v826_v29  ;;  %v834_v53 = vadd.f32 %v833_v47, %v663_v48 }
 0x21d   :  { %v840_v58 = vadd.f32 %v839_v54, %v834_v53 }
 0x21e   :  { %v1014_v35 = vpop.xlane.xlu1 %1013  ;;  %v1008_v40 = vpop.xlane.xlu0 %1007 }
 0x21f   :  { %v1769_v50 = vadd.f32 -1.0, %v1008_v40  ;;  %v1770_v56 = vadd.f32 -1.0, %v1014_v35 }
 0x221   :  { %v1010_v55 = vmax.f32 %v1769_v50, 0.0  ;;  %v1016_v61 = vmax.f32 %v1770_v56, 0.0 }
 0x222   :  { %v1003_v41 = vpop.xlane.xlu1 %1002 }
 0x223   :  { %1005 = vst.msk [vmem:[#allocation5] sm:$0xff] %vm1004_vm9, %v1003_v41  ;;  %v1011_v60 = vadd.f32 %v1010_v55, %v840_v58 }
 0x225   :  { %v1017_v3 = vadd.f32 %v1016_v61, %v1011_v60 }
 0x226   :  { %v1191_v46 = vpop.xlane.xlu0 %1190  ;;  %v1185_v51 = vpop.xlane.xlu1 %1184 }
 0x227   :  { %v1773_v59 = vadd.f32 -1.0, %v1185_v51  ;;  %v1774_v2 = vadd.f32 -1.0, %v1191_v46 }
 0x229   :  { %v1187_v1 = vmax.f32 %v1773_v59, 0.0  ;;  %v1193_v7 = vmax.f32 %v1774_v2, 0.0 }
 0x22a   :  { %v1180_v52 = vpop.xlane.xlu0 %1179 }
 0x22b   :  { %1182 = vst.msk [vmem:[#allocation5] sm:$0xff] %vm1181_vm10, %v1180_v52  ;;  %v1188_v6 = vadd.f32 %v1187_v1, %v1017_v3 }
 0x22d   :  { %v1194_v11 = vadd.f32 %v1193_v7, %v1188_v6 }
 0x22e   :  { %v1368_v57 = vpop.xlane.xlu1 %1367  ;;  %v1362_v62 = vpop.xlane.xlu0 %1361 }
 0x22f   :  { %v1777_v4 = vadd.f32 -1.0, %v1362_v62  ;;  %v1778_v12 = vadd.f32 -1.0, %v1368_v57 }
 0x231   :  { %v1364_v9 = vmax.f32 %v1777_v4, 0.0  ;;  %v1370_v16 = vmax.f32 %v1778_v12, 0.0 }
 0x232   :  { %v1357_v0 = vpop.xlane.xlu1 %1356 }
 0x233   :  { %1359 = vst.msk [vmem:[#allocation5] sm:$0xff] %vm1358_vm11, %v1357_v0  ;;  %v1365_v14 = vadd.f32 %v1364_v9, %v1194_v11 }
 0x235   :  { %v1371_v19 = vadd.f32 %v1370_v16, %v1365_v14 }
 0x236   :  { %v1545_v5 = vpop.xlane.xlu0 %1544  ;;  %v1539_v8 = vpop.xlane.xlu1 %1538 }
 0x237   :  { %v1781_v13 = vadd.f32 -1.0, %v1539_v8  ;;  %v1782_v18 = vadd.f32 -1.0, %v1545_v5 }
 0x239   :  { %v1541_v17 = vmax.f32 %v1781_v13, 0.0  ;;  %v1547_v22 = vmax.f32 %v1782_v18, 0.0 }
 0x23a   :  { %v1534_v10 = vpop.xlane.xlu0 %1533 }
 0x23b   :  { %1536 = vst.msk [vmem:[#allocation5] sm:$0xff] %vm1535_vm12, %v1534_v10  ;;  %v1542_v21 = vadd.f32 %v1541_v17, %v1371_v19 }
 0x23e   :  { %v1716_v15 = vpop.xlane.xlu0 %1715 }
 0x23f   :  { %v1785_v20 = vadd.f32 -1.0, %v1716_v15 }
 0x242   :  { %v1711_v63 = vpop.xlane.xlu1 %1710 }
 0x243   :  { %1713 = vst.msk [vmem:[#allocation5] sm:$0xff] %vm1712_vm13, %v1711_v63 }
 0x244   :  { %2259 = shalt.err (!%p2256_p12)
}
 0x245   :  { %s2260_s13 = scalar_lea.hbm %s2583_s8, 128 }
 0x246   :  { %p2261_p13 = scmp.ne.s32.totalorder %s2583_s8, %s2260_s13  ;;  %p2264_p0 = scmp.lt.u32.totalorder %s2260_s13, %s2583_s8 }
 0x248   :  { %p2266_p1 = pnand %p2264_p0, %p2261_p13 }
 0x24a   :  { %2269 = shalt.err (!%p2266_p1)
}
 0x24b   :  { %1738 = dma.vmem_to_hbm [thread:$0]  %s1736_s30, 128, %s2583_s8, [#allocation4]   ;;  %v1718_v23 = vmax.f32 %v1785_v20, 0.0  ;;  %v1722_v24 = vpop.xlane.xlu1 %1721  ;;  %v1548_v25 = vadd.f32 %v1547_v22, %v1542_v21 }
 0x24c   :  { %v1786_v26 = vadd.f32 -1.0, %v1722_v24 }
 0x24d   :  { %v1719_v27 = vadd.f32 %v1718_v23, %v1548_v25 }
 0x24e   :  { %v1724_v28 = vmax.f32 %v1786_v26, 0.0 }
 0x250   :  { %v1725_v29 = vadd.f32 %v1724_v28, %v1719_v27 }
 0x252   :  { %1726 = vst.msk [vmem:[%s2584_s9] sm:$0xff] %vm298_vm0, %v1725_v29 }
 0x253   :  { %2272 = dma.done.wait [#allocation4], 128  }
 0x254   :  { %2273 = vsyncadd [#allocation4], 4294967168 }
 0x255   :  { %1748 = vsyncpa [#allocation3], 1 }
 0x256   :  { %1749 = vsyncpa [#allocation4], 1 }

</bundles_post_ra>
